<compile_context>
chip_gen: v7x
topology: tpu7x:2x2x1
jax: 0.10.0
libtpu: 0.0.40
codegen_flags: <defaults>
</compile_context>

<pallas_src>
import numpy as np
import jax
import jax.numpy as jnp
from jax.experimental import pallas as pl
from jax.experimental.pallas import tpu as pltpu

EPS = float(jnp.finfo(jnp.float32).eps)   # matches torch.finfo(torch.float32).eps


def resrnn_kernel(x2d_ref, xcat_ref, wih_ref, bih_ref, whh_ref, wproj_ref, bproj_ref, out_ref):
    B, _ = x2d_ref.shape
    _, T, C2 = xcat_ref.shape             # C2 = 2*C
    H2, H8 = whh_ref.shape                # 2H, 8H
    H3 = 3 * H2

    # ---- GroupNorm(1, C) stats: per-batch over all (T, C); affine already folded into wih/bih.
    x2d = x2d_ref[...]                                            # (B, T*C) lane-dense residual base
    mean = jnp.mean(x2d, axis=1, keepdims=True)                   # (B, 1)
    var = jnp.mean((x2d - mean) ** 2, axis=1, keepdims=True)      # biased variance (PyTorch GN)
    inv = jax.lax.rsqrt(var + EPS)

    # xcat[:, t, :] = [x(t) | x(T-1-t)]; same stats normalise both halves, giving time-aligned
    # fwd/bwd inputs for ONE hoisted i2h matmul (GN gamma/beta folded into wih/bih in the wrapper).
    xhat_cat = (xcat_ref[...] - mean[:, :, None]) * inv[:, :, None]          # (B, T, 2C)

    xg = (jnp.dot(xhat_cat.reshape(B * T, C2), wih_ref[...],
                  preferred_element_type=jnp.float32) + bih_ref[...])        # (B*T, 8H)
    xg = xg.reshape(B, T, H8)

    whh = whh_ref[...]                                            # (2H, 8H) bf16, block-diagonal

    # ---- Fused bidirectional recurrence: one bf16 matmul + 3 EUP pushes per step.
    h_cat = jnp.zeros((B, H2), jnp.float32)                       # [h_fwd | h_bwd]
    c_cat = jnp.zeros((B, H2), jnp.float32)
    h_steps = []
    for t in range(T):                                            # T static & small: full unroll
        # TODO(synk): switch to lax.fori_loop + per-step projection accumulation once T grows
        #             beyond ~16-32 (Python unrolling does not bound live ranges -> vreg spills).
        g = xg[:, t, :] + jnp.dot(h_cat.astype(jnp.bfloat16), whh,
                                  preferred_element_type=jnp.float32)        # (B, 8H)
        sig = jax.nn.sigmoid(g[:, :H3])                           # [i_cat | f_cat | o_cat], 1 push
        i_cat = sig[:, 0:H2]
        f_cat = sig[:, H2:2 * H2]
        o_cat = sig[:, 2 * H2:H3]
        g_cat = jnp.tanh(g[:, H3:])                               # both directions' g gate, 1 push
        c_cat = f_cat * c_cat + i_cat * g_cat
        h_cat = o_cat * jnp.tanh(c_cat)                           # 1 push
        h_steps.append(h_cat)                                     # fwd time t | bwd time T-1-t

    # ---- Projection + residual: one block matmul applies Linear(2H->C) per step AND re-aligns the
    #      backward times; no jnp.stack / (B*T, H) reshape repacks.
    h_lanes = jnp.concatenate(h_steps, axis=-1)                   # (B, T*2H) lane concat
    proj = (jnp.dot(h_lanes, wproj_ref[...], preferred_element_type=jnp.float32)
            + bproj_ref[...])                                     # (B, T*C)
    out_ref[...] = x2d + proj                                     # lane-dense (B, T*C) store


def _split_gates(w, H):
    # PyTorch LSTM order along the leading dim: [i, f, g, o], each H wide.
    return w[0:H], w[H:2 * H], w[2 * H:3 * H], w[3 * H:4 * H]


def _pack_recurrent(params):
    """One-time wrapper packing: gate permutation, direction fusion, GN-affine fold."""
    C = params["gamma"].shape[0]
    H = params["whh_f"].shape[1]

    i_f, f_f, g_f, o_f = _split_gates(params["wih_f"], H)         # (H, C) each
    i_b, f_b, g_b, o_b = _split_gates(params["wih_b"], H)
    zC = jnp.zeros((C, H), jnp.float32)
    top = lambda w: jnp.concatenate([w.T, zC], axis=0)            # fwd rows act on x(t)
    bot = lambda w: jnp.concatenate([zC, w.T], axis=0)            # bwd rows act on x(T-1-t)
    # Column order [i_f i_b f_f f_b o_f o_b g_f g_b] -> one contiguous sigmoid slab + one tanh slab.
    wih_blk = jnp.concatenate([top(i_f), bot(i_b), top(f_f), bot(f_b),
                               top(o_f), bot(o_b), top(g_f), bot(g_b)], axis=1)   # (2C, 8H)

    bi_f, bf_f, bg_f, bo_f = _split_gates(params["b_f"][0], H)
    bi_b, bf_b, bg_b, bo_b = _split_gates(params["b_b"][0], H)
    b_cat = jnp.concatenate([bi_f, bi_b, bf_f, bf_b,
                             bo_f, bo_b, bg_f, bg_b])[None, :]                    # (1, 8H)

    # Fold GroupNorm affine: yn = xhat*gamma + beta  =>  yn @ W = xhat @ (gamma*W) + (b + beta @ W).
    gamma2 = jnp.concatenate([params["gamma"], params["gamma"]])[:, None]         # (2C, 1)
    beta2 = jnp.concatenate([params["beta"], params["beta"]])[None, :]            # (1, 2C)
    b_ih = b_cat + beta2 @ wih_blk
    w_ih = gamma2 * wih_blk

    ih_f, fh_f, gh_f, oh_f = _split_gates(params["whh_f"], H)     # (H, H) each
    ih_b, fh_b, gh_b, oh_b = _split_gates(params["whh_b"], H)
    zH = jnp.zeros((H, H), jnp.float32)
    topH = lambda w: jnp.concatenate([w.T, zH], axis=0)
    botH = lambda w: jnp.concatenate([zH, w.T], axis=0)
    # bf16 recurrent weights (f32 accumulate): single-pass MXU matmul on the serial critical path.
    whh_blk = jnp.concatenate([topH(ih_f), botH(ih_b), topH(fh_f), botH(fh_b),
                               topH(oh_f), botH(oh_b), topH(gh_f), botH(gh_b)],
                              axis=1).astype(jnp.bfloat16)                        # (2H, 8H)
    return w_ih, b_ih, whh_blk


def _pack_projection(params, T):
    """Block projection (T*2H, T*C): Linear(2H->C) per step + backward time re-alignment."""
    C = params["gamma"].shape[0]
    H = params["whh_f"].shape[1]
    wp = params["wp"]                                              # (C, 2H): [fwd | bwd] features
    wpf, wpb = wp[:, :H].T, wp[:, H:].T                            # (H, C) each
    wbig = jnp.zeros((T * 2 * H, T * C), jnp.float32)
    # TODO(synk): this block weight is T-times redundant in memory; at large T use per-step
    #             projection accumulation (or a time grid) instead.
    for s in range(T):                                             # static T, built once at trace
        wbig = wbig.at[s * 2 * H:s * 2 * H + H, s * C:(s + 1) * C].set(wpf)          # h_fwd(s)
        wbig = wbig.at[s * 2 * H + H:(s + 1) * 2 * H, (T - 1 - s) * C:(T - s) * C].set(wpb)
    bbig = jnp.tile(params["bp"], (1, T))                          # (1, T*C)
    return wbig, bbig


def resrnn_pallas(x, params):
    """x: (B, C, T) float32 -> (B, C, T) float32, matching the PyTorch module."""
    B, C, T = x.shape

    # Layout plumbing + weight packing done once in the wrapper (outside the kernel).
    # TODO(synk): at production (B, T) sizes, fold these transposes/concats into a batch-grid
    #             BlockSpec index_map instead of materialising extra HBM copies.
    x_btc = jnp.transpose(x, (0, 2, 1))                            # (B, T, C)
    x2d = x_btc.reshape(B, T * C)                                  # lane-dense residual/store view
    x_cat = jnp.concatenate([x_btc, x_btc[:, ::-1, :]], axis=-1)   # (B, T, 2C): [x(t) | x(T-1-t)]

    w_ih, b_ih, whh_blk = _pack_recurrent(params)
    w_proj, b_proj = _pack_projection(params, T)

    args = (x2d, x_cat, w_ih, b_ih, whh_blk, w_proj, b_proj)
    out2d = pl.pallas_call(
        resrnn_kernel,
        out_shape=jax.ShapeDtypeStruct((B, T * C), jnp.float32),
        in_specs=[pl.BlockSpec(memory_space=pltpu.MemorySpace.VMEM)] * len(args),
        out_specs=pl.BlockSpec(memory_space=pltpu.MemorySpace.VMEM),
        # TODO(synk): on v7x add grid=(B,) + dimension_semantics=("parallel",) to engage both
        #             TensorCores and budget vmem_limit_bytes against its 64 MiB VMEM; the gridless
        #             single call is right for v5e/v6e at these shapes.
    )(*args)
    return jnp.transpose(out2d.reshape(B, T, C), (0, 2, 1))        # back to (B, C, T)


def resrnn_reference(x, params):
    """Pure-JAX f32 reference matching the PyTorch forward exactly."""
    B, C, T = x.shape
    H = params["whh_f"].shape[1]
    mean = jnp.mean(x, axis=(1, 2), keepdims=True)
    var = jnp.mean((x - mean) ** 2, axis=(1, 2), keepdims=True)
    xn = (x - mean) / jnp.sqrt(var + EPS)
    xn = xn * params["gamma"][None, :, None] + params["beta"][None, :, None]
    y = jnp.transpose(xn, (0, 2, 1))                               # (B, T, C)

    def run_dir(wih, whh, bias, reverse):
        def step(carry, x_t):
            h, c = carry
            g = x_t @ wih.T + h @ whh.T + bias[0]
            i_g = jax.nn.sigmoid(g[:, 0:H])
            f_g = jax.nn.sigmoid(g[:, H:2 * H])
            g_g = jnp.tanh(g[:, 2 * H:3 * H])
            o_g = jax.nn.sigmoid(g[:, 3 * H:4 * H])
            c = f_g * c + i_g * g_g
            h = o_g * jnp.tanh(c)
            return (h, c), h
        ys = jnp.swapaxes(y, 0, 1)                                 # (T, B, C)
        if reverse:
            ys = ys[::-1]
        _, hs = jax.lax.scan(step, (jnp.zeros((B, H)), jnp.zeros((B, H))), ys)
        if reverse:
            hs = hs[::-1]
        return jnp.swapaxes(hs, 0, 1)                              # (B, T, H)

    hf = run_dir(params["wih_f"], params["whh_f"], params["b_f"], False)
    hb = run_dir(params["wih_b"], params["whh_b"], params["b_b"], True)
    rnn_out = jnp.concatenate([hf, hb], axis=-1)                   # (B, T, 2H)
    proj = rnn_out.reshape(B * T, 2 * H) @ params["wp"].T + params["bp"]
    return x + jnp.transpose(proj.reshape(B, T, C), (0, 2, 1))


def make_params(key, C, H):
    ks = jax.random.split(key, 10)
    s = 0.1
    return {
        "gamma": 1.0 + s * jax.random.normal(ks[0], (C,), jnp.float32),
        "beta": s * jax.random.normal(ks[1], (C,), jnp.float32),
        "wih_f": s * jax.random.normal(ks[2], (4 * H, C), jnp.float32),
        "whh_f": s * jax.random.normal(ks[3], (4 * H, H), jnp.float32),
        "b_f": s * jax.random.normal(ks[4], (1, 4 * H), jnp.float32),    # b_ih + b_hh fused
        "wih_b": s * jax.random.normal(ks[5], (4 * H, C), jnp.float32),
        "whh_b": s * jax.random.normal(ks[6], (4 * H, H), jnp.float32),
        "b_b": s * jax.random.normal(ks[7], (1, 4 * H), jnp.float32),
        "wp": s * jax.random.normal(ks[8], (C, 2 * H), jnp.float32),     # Linear(2H, C).weight
        "bp": s * jax.random.normal(ks[9], (1, C), jnp.float32),
    }


if __name__ == "__main__":
    B, C, T, H = 2, 16, 8, 32          # batch, input_size (channels), seq_len, hidden_size
    key = jax.random.PRNGKey(0)
    kx, kp = jax.random.split(key)
    x = jax.random.normal(kx, (B, C, T), jnp.float32)
    params = make_params(kp, C, H)

    fwd = jax.jit(resrnn_pallas)
    out = jax.block_until_ready(fwd(x, params))

    ref = jax.block_until_ready(resrnn_reference(x, params))
    # bf16 recurrent weights (per perf feedback) shift the recurrence numerics by ~1e-3 absolute
    # relative to the f32 reference; tolerance set accordingly (a functional bug would be >>0.1).
    np.testing.assert_allclose(np.asarray(out), np.asarray(ref), rtol=5e-3, atol=5e-3)
    print("KERNEL_OK")
</pallas_src>

<mosaic_0001>
module attributes {stable_mosaic.version = 11 : i64} {
  func.func @resrnn_kernel(%arg0: memref<2x128xf32, #tpu.memory_space<vmem>>, %arg1: memref<2x8x32xf32, #tpu.memory_space<vmem>>, %arg2: memref<32x256xf32, #tpu.memory_space<vmem>>, %arg3: memref<1x256xf32, #tpu.memory_space<vmem>>, %arg4: memref<64x256xbf16, #tpu.memory_space<vmem>>, %arg5: memref<512x128xf32, #tpu.memory_space<vmem>>, %arg6: memref<1x128xf32, #tpu.memory_space<vmem>>, %arg7: memref<2x128xf32, #tpu.memory_space<vmem>>) attributes {dimension_semantics = [], scalar_prefetch = 0 : i64, scratch_operands = 0 : i64, tpu.core_type = #tpu.core_type<tc>} {
    %c0 = arith.constant 0 : index
    %c0_0 = arith.constant 0 : index
    %0 = vector.load %arg0[%c0, %c0_0] : memref<2x128xf32, #tpu.memory_space<vmem>>, vector<2x128xf32>
    %cst = arith.constant dense<0.000000e+00> : vector<2xf32>
    %1 = vector.multi_reduction <add>, %0, %cst [1] : vector<2x128xf32> to vector<2xf32>
    %2 = vector.shape_cast %1 : vector<2xf32> to vector<2x1xf32>
    %cst_1 = arith.constant 1.280000e+02 : f32
    %3 = vector.broadcast %cst_1 : f32 to vector<2x1xf32>
    %4 = arith.divf %2, %3 : vector<2x1xf32>
    %5 = vector.broadcast %4 : vector<2x1xf32> to vector<2x128xf32>
    %6 = arith.subf %0, %5 : vector<2x128xf32>
    %7 = arith.mulf %6, %6 : vector<2x128xf32>
    %cst_2 = arith.constant dense<0.000000e+00> : vector<2xf32>
    %8 = vector.multi_reduction <add>, %7, %cst_2 [1] : vector<2x128xf32> to vector<2xf32>
    %9 = vector.shape_cast %8 : vector<2xf32> to vector<2x1xf32>
    %cst_3 = arith.constant 1.280000e+02 : f32
    %10 = vector.broadcast %cst_3 : f32 to vector<2x1xf32>
    %11 = arith.divf %9, %10 : vector<2x1xf32>
    %cst_4 = arith.constant 1.1920929E-7 : f32
    %12 = vector.broadcast %cst_4 : f32 to vector<2x1xf32>
    %13 = arith.addf %11, %12 : vector<2x1xf32>
    %14 = math.rsqrt %13 : vector<2x1xf32>
    %c0_5 = arith.constant 0 : index
    %c0_6 = arith.constant 0 : index
    %c0_7 = arith.constant 0 : index
    %15 = vector.load %arg1[%c0_5, %c0_6, %c0_7] : memref<2x8x32xf32, #tpu.memory_space<vmem>>, vector<2x8x32xf32>
    %16 = vector.shape_cast %4 : vector<2x1xf32> to vector<2x1x1xf32>
    %17 = vector.broadcast %16 : vector<2x1x1xf32> to vector<2x8x32xf32>
    %18 = arith.subf %15, %17 : vector<2x8x32xf32>
    %19 = vector.shape_cast %14 : vector<2x1xf32> to vector<2x1x1xf32>
    %20 = vector.broadcast %19 : vector<2x1x1xf32> to vector<2x8x32xf32>
    %21 = arith.mulf %18, %20 : vector<2x8x32xf32>
    %22 = vector.shape_cast %21 : vector<2x8x32xf32> to vector<16x32xf32>
    %c0_8 = arith.constant 0 : index
    %c0_9 = arith.constant 0 : index
    %23 = vector.load %arg2[%c0_8, %c0_9] : memref<32x256xf32, #tpu.memory_space<vmem>>, vector<32x256xf32>
    %cst_10 = arith.constant dense<0.000000e+00> : vector<16x256xf32>
    %24 = tpu.matmul %22, %23, %cst_10 {dimension_numbers = #tpu.dot_dimension_numbers<[1], [0], [0], [1], [0, 0, 1, 1], [], []>} : vector<16x32xf32>, vector<32x256xf32>, vector<16x256xf32> -> vector<16x256xf32>
    %c0_11 = arith.constant 0 : index
    %c0_12 = arith.constant 0 : index
    %25 = vector.load %arg3[%c0_11, %c0_12] : memref<1x256xf32, #tpu.memory_space<vmem>>, vector<1x256xf32>
    %26 = vector.broadcast %25 : vector<1x256xf32> to vector<16x256xf32>
    %27 = arith.addf %24, %26 : vector<16x256xf32>
    %28 = vector.shape_cast %27 : vector<16x256xf32> to vector<2x8x256xf32>
    %c0_13 = arith.constant 0 : index
    %c0_14 = arith.constant 0 : index
    %29 = vector.load %arg4[%c0_13, %c0_14] : memref<64x256xbf16, #tpu.memory_space<vmem>>, vector<64x256xbf16>
    %cst_15 = arith.constant 0.000000e+00 : f32
    %30 = vector.broadcast %cst_15 : f32 to vector<2x64xf32>
    %cst_16 = arith.constant 0.000000e+00 : f32
    %31 = vector.broadcast %cst_16 : f32 to vector<2x64xf32>
    %32 = vector.extract_strided_slice %28 {offsets = [0, 0, 0], sizes = [2, 1, 256], strides = [1, 1, 1]} : vector<2x8x256xf32> to vector<2x1x256xf32>
    %33 = vector.shape_cast %32 : vector<2x1x256xf32> to vector<2x256xf32>
    %34 = arith.truncf %30 : vector<2x64xf32> to vector<2x64xbf16>
    %cst_17 = arith.constant dense<0.000000e+00> : vector<2x256xf32>
    %35 = tpu.matmul %34, %29, %cst_17 {dimension_numbers = #tpu.dot_dimension_numbers<[1], [0], [0], [1], [0, 0, 1, 1], [], []>} : vector<2x64xbf16>, vector<64x256xbf16>, vector<2x256xf32> -> vector<2x256xf32>
    %36 = arith.addf %33, %35 : vector<2x256xf32>
    %37 = vector.extract_strided_slice %36 {offsets = [0, 0], sizes = [2, 192], strides = [1, 1]} : vector<2x256xf32> to vector<2x192xf32>
    %38 = arith.negf %37 : vector<2x192xf32>
    %39 = math.exp %38 : vector<2x192xf32>
    %cst_18 = arith.constant 1.000000e+00 : f32
    %40 = vector.broadcast %cst_18 : f32 to vector<2x192xf32>
    %41 = arith.addf %40, %39 : vector<2x192xf32>
    %42 = arith.divf %40, %41 : vector<2x192xf32>
    %43 = vector.extract_strided_slice %42 {offsets = [0, 0], sizes = [2, 64], strides = [1, 1]} : vector<2x192xf32> to vector<2x64xf32>
    %44 = vector.extract_strided_slice %42 {offsets = [0, 64], sizes = [2, 64], strides = [1, 1]} : vector<2x192xf32> to vector<2x64xf32>
    %45 = vector.extract_strided_slice %42 {offsets = [0, 128], sizes = [2, 64], strides = [1, 1]} : vector<2x192xf32> to vector<2x64xf32>
    %46 = vector.extract_strided_slice %36 {offsets = [0, 192], sizes = [2, 64], strides = [1, 1]} : vector<2x256xf32> to vector<2x64xf32>
    %47 = math.tanh %46 : vector<2x64xf32>
    %48 = arith.mulf %44, %31 : vector<2x64xf32>
    %49 = arith.mulf %43, %47 : vector<2x64xf32>
    %50 = arith.addf %48, %49 : vector<2x64xf32>
    %51 = math.tanh %50 : vector<2x64xf32>
    %52 = arith.mulf %45, %51 : vector<2x64xf32>
    %53 = vector.extract_strided_slice %28 {offsets = [0, 1, 0], sizes = [2, 1, 256], strides = [1, 1, 1]} : vector<2x8x256xf32> to vector<2x1x256xf32>
    %54 = vector.shape_cast %53 : vector<2x1x256xf32> to vector<2x256xf32>
    %55 = arith.truncf %52 : vector<2x64xf32> to vector<2x64xbf16>
    %cst_19 = arith.constant dense<0.000000e+00> : vector<2x256xf32>
    %56 = tpu.matmul %55, %29, %cst_19 {dimension_numbers = #tpu.dot_dimension_numbers<[1], [0], [0], [1], [0, 0, 1, 1], [], []>} : vector<2x64xbf16>, vector<64x256xbf16>, vector<2x256xf32> -> vector<2x256xf32>
    %57 = arith.addf %54, %56 : vector<2x256xf32>
    %58 = vector.extract_strided_slice %57 {offsets = [0, 0], sizes = [2, 192], strides = [1, 1]} : vector<2x256xf32> to vector<2x192xf32>
    %59 = arith.negf %58 : vector<2x192xf32>
    %60 = math.exp %59 : vector<2x192xf32>
    %cst_20 = arith.constant 1.000000e+00 : f32
    %61 = vector.broadcast %cst_20 : f32 to vector<2x192xf32>
    %62 = arith.addf %61, %60 : vector<2x192xf32>
    %63 = arith.divf %61, %62 : vector<2x192xf32>
    %64 = vector.extract_strided_slice %63 {offsets = [0, 0], sizes = [2, 64], strides = [1, 1]} : vector<2x192xf32> to vector<2x64xf32>
    %65 = vector.extract_strided_slice %63 {offsets = [0, 64], sizes = [2, 64], strides = [1, 1]} : vector<2x192xf32> to vector<2x64xf32>
    %66 = vector.extract_strided_slice %63 {offsets = [0, 128], sizes = [2, 64], strides = [1, 1]} : vector<2x192xf32> to vector<2x64xf32>
    %67 = vector.extract_strided_slice %57 {offsets = [0, 192], sizes = [2, 64], strides = [1, 1]} : vector<2x256xf32> to vector<2x64xf32>
    %68 = math.tanh %67 : vector<2x64xf32>
    %69 = arith.mulf %65, %50 : vector<2x64xf32>
    %70 = arith.mulf %64, %68 : vector<2x64xf32>
    %71 = arith.addf %69, %70 : vector<2x64xf32>
    %72 = math.tanh %71 : vector<2x64xf32>
    %73 = arith.mulf %66, %72 : vector<2x64xf32>
    %74 = vector.extract_strided_slice %28 {offsets = [0, 2, 0], sizes = [2, 1, 256], strides = [1, 1, 1]} : vector<2x8x256xf32> to vector<2x1x256xf32>
    %75 = vector.shape_cast %74 : vector<2x1x256xf32> to vector<2x256xf32>
    %76 = arith.truncf %73 : vector<2x64xf32> to vector<2x64xbf16>
    %cst_21 = arith.constant dense<0.000000e+00> : vector<2x256xf32>
    %77 = tpu.matmul %76, %29, %cst_21 {dimension_numbers = #tpu.dot_dimension_numbers<[1], [0], [0], [1], [0, 0, 1, 1], [], []>} : vector<2x64xbf16>, vector<64x256xbf16>, vector<2x256xf32> -> vector<2x256xf32>
    %78 = arith.addf %75, %77 : vector<2x256xf32>
    %79 = vector.extract_strided_slice %78 {offsets = [0, 0], sizes = [2, 192], strides = [1, 1]} : vector<2x256xf32> to vector<2x192xf32>
    %80 = arith.negf %79 : vector<2x192xf32>
    %81 = math.exp %80 : vector<2x192xf32>
    %cst_22 = arith.constant 1.000000e+00 : f32
    %82 = vector.broadcast %cst_22 : f32 to vector<2x192xf32>
    %83 = arith.addf %82, %81 : vector<2x192xf32>
    %84 = arith.divf %82, %83 : vector<2x192xf32>
    %85 = vector.extract_strided_slice %84 {offsets = [0, 0], sizes = [2, 64], strides = [1, 1]} : vector<2x192xf32> to vector<2x64xf32>
    %86 = vector.extract_strided_slice %84 {offsets = [0, 64], sizes = [2, 64], strides = [1, 1]} : vector<2x192xf32> to vector<2x64xf32>
    %87 = vector.extract_strided_slice %84 {offsets = [0, 128], sizes = [2, 64], strides = [1, 1]} : vector<2x192xf32> to vector<2x64xf32>
    %88 = vector.extract_strided_slice %78 {offsets = [0, 192], sizes = [2, 64], strides = [1, 1]} : vector<2x256xf32> to vector<2x64xf32>
    %89 = math.tanh %88 : vector<2x64xf32>
    %90 = arith.mulf %86, %71 : vector<2x64xf32>
    %91 = arith.mulf %85, %89 : vector<2x64xf32>
    %92 = arith.addf %90, %91 : vector<2x64xf32>
    %93 = math.tanh %92 : vector<2x64xf32>
    %94 = arith.mulf %87, %93 : vector<2x64xf32>
    %95 = vector.extract_strided_slice %28 {offsets = [0, 3, 0], sizes = [2, 1, 256], strides = [1, 1, 1]} : vector<2x8x256xf32> to vector<2x1x256xf32>
    %96 = vector.shape_cast %95 : vector<2x1x256xf32> to vector<2x256xf32>
    %97 = arith.truncf %94 : vector<2x64xf32> to vector<2x64xbf16>
    %cst_23 = arith.constant dense<0.000000e+00> : vector<2x256xf32>
    %98 = tpu.matmul %97, %29, %cst_23 {dimension_numbers = #tpu.dot_dimension_numbers<[1], [0], [0], [1], [0, 0, 1, 1], [], []>} : vector<2x64xbf16>, vector<64x256xbf16>, vector<2x256xf32> -> vector<2x256xf32>
    %99 = arith.addf %96, %98 : vector<2x256xf32>
    %100 = vector.extract_strided_slice %99 {offsets = [0, 0], sizes = [2, 192], strides = [1, 1]} : vector<2x256xf32> to vector<2x192xf32>
    %101 = arith.negf %100 : vector<2x192xf32>
    %102 = math.exp %101 : vector<2x192xf32>
    %cst_24 = arith.constant 1.000000e+00 : f32
    %103 = vector.broadcast %cst_24 : f32 to vector<2x192xf32>
    %104 = arith.addf %103, %102 : vector<2x192xf32>
    %105 = arith.divf %103, %104 : vector<2x192xf32>
    %106 = vector.extract_strided_slice %105 {offsets = [0, 0], sizes = [2, 64], strides = [1, 1]} : vector<2x192xf32> to vector<2x64xf32>
    %107 = vector.extract_strided_slice %105 {offsets = [0, 64], sizes = [2, 64], strides = [1, 1]} : vector<2x192xf32> to vector<2x64xf32>
    %108 = vector.extract_strided_slice %105 {offsets = [0, 128], sizes = [2, 64], strides = [1, 1]} : vector<2x192xf32> to vector<2x64xf32>
    %109 = vector.extract_strided_slice %99 {offsets = [0, 192], sizes = [2, 64], strides = [1, 1]} : vector<2x256xf32> to vector<2x64xf32>
    %110 = math.tanh %109 : vector<2x64xf32>
    %111 = arith.mulf %107, %92 : vector<2x64xf32>
    %112 = arith.mulf %106, %110 : vector<2x64xf32>
    %113 = arith.addf %111, %112 : vector<2x64xf32>
    %114 = math.tanh %113 : vector<2x64xf32>
    %115 = arith.mulf %108, %114 : vector<2x64xf32>
    %116 = vector.extract_strided_slice %28 {offsets = [0, 4, 0], sizes = [2, 1, 256], strides = [1, 1, 1]} : vector<2x8x256xf32> to vector<2x1x256xf32>
    %117 = vector.shape_cast %116 : vector<2x1x256xf32> to vector<2x256xf32>
    %118 = arith.truncf %115 : vector<2x64xf32> to vector<2x64xbf16>
    %cst_25 = arith.constant dense<0.000000e+00> : vector<2x256xf32>
    %119 = tpu.matmul %118, %29, %cst_25 {dimension_numbers = #tpu.dot_dimension_numbers<[1], [0], [0], [1], [0, 0, 1, 1], [], []>} : vector<2x64xbf16>, vector<64x256xbf16>, vector<2x256xf32> -> vector<2x256xf32>
    %120 = arith.addf %117, %119 : vector<2x256xf32>
    %121 = vector.extract_strided_slice %120 {offsets = [0, 0], sizes = [2, 192], strides = [1, 1]} : vector<2x256xf32> to vector<2x192xf32>
    %122 = arith.negf %121 : vector<2x192xf32>
    %123 = math.exp %122 : vector<2x192xf32>
    %cst_26 = arith.constant 1.000000e+00 : f32
    %124 = vector.broadcast %cst_26 : f32 to vector<2x192xf32>
    %125 = arith.addf %124, %123 : vector<2x192xf32>
    %126 = arith.divf %124, %125 : vector<2x192xf32>
    %127 = vector.extract_strided_slice %126 {offsets = [0, 0], sizes = [2, 64], strides = [1, 1]} : vector<2x192xf32> to vector<2x64xf32>
    %128 = vector.extract_strided_slice %126 {offsets = [0, 64], sizes = [2, 64], strides = [1, 1]} : vector<2x192xf32> to vector<2x64xf32>
    %129 = vector.extract_strided_slice %126 {offsets = [0, 128], sizes = [2, 64], strides = [1, 1]} : vector<2x192xf32> to vector<2x64xf32>
    %130 = vector.extract_strided_slice %120 {offsets = [0, 192], sizes = [2, 64], strides = [1, 1]} : vector<2x256xf32> to vector<2x64xf32>
    %131 = math.tanh %130 : vector<2x64xf32>
    %132 = arith.mulf %128, %113 : vector<2x64xf32>
    %133 = arith.mulf %127, %131 : vector<2x64xf32>
    %134 = arith.addf %132, %133 : vector<2x64xf32>
    %135 = math.tanh %134 : vector<2x64xf32>
    %136 = arith.mulf %129, %135 : vector<2x64xf32>
    %137 = vector.extract_strided_slice %28 {offsets = [0, 5, 0], sizes = [2, 1, 256], strides = [1, 1, 1]} : vector<2x8x256xf32> to vector<2x1x256xf32>
    %138 = vector.shape_cast %137 : vector<2x1x256xf32> to vector<2x256xf32>
    %139 = arith.truncf %136 : vector<2x64xf32> to vector<2x64xbf16>
    %cst_27 = arith.constant dense<0.000000e+00> : vector<2x256xf32>
    %140 = tpu.matmul %139, %29, %cst_27 {dimension_numbers = #tpu.dot_dimension_numbers<[1], [0], [0], [1], [0, 0, 1, 1], [], []>} : vector<2x64xbf16>, vector<64x256xbf16>, vector<2x256xf32> -> vector<2x256xf32>
    %141 = arith.addf %138, %140 : vector<2x256xf32>
    %142 = vector.extract_strided_slice %141 {offsets = [0, 0], sizes = [2, 192], strides = [1, 1]} : vector<2x256xf32> to vector<2x192xf32>
    %143 = arith.negf %142 : vector<2x192xf32>
    %144 = math.exp %143 : vector<2x192xf32>
    %cst_28 = arith.constant 1.000000e+00 : f32
    %145 = vector.broadcast %cst_28 : f32 to vector<2x192xf32>
    %146 = arith.addf %145, %144 : vector<2x192xf32>
    %147 = arith.divf %145, %146 : vector<2x192xf32>
    %148 = vector.extract_strided_slice %147 {offsets = [0, 0], sizes = [2, 64], strides = [1, 1]} : vector<2x192xf32> to vector<2x64xf32>
    %149 = vector.extract_strided_slice %147 {offsets = [0, 64], sizes = [2, 64], strides = [1, 1]} : vector<2x192xf32> to vector<2x64xf32>
    %150 = vector.extract_strided_slice %147 {offsets = [0, 128], sizes = [2, 64], strides = [1, 1]} : vector<2x192xf32> to vector<2x64xf32>
    %151 = vector.extract_strided_slice %141 {offsets = [0, 192], sizes = [2, 64], strides = [1, 1]} : vector<2x256xf32> to vector<2x64xf32>
    %152 = math.tanh %151 : vector<2x64xf32>
    %153 = arith.mulf %149, %134 : vector<2x64xf32>
    %154 = arith.mulf %148, %152 : vector<2x64xf32>
    %155 = arith.addf %153, %154 : vector<2x64xf32>
    %156 = math.tanh %155 : vector<2x64xf32>
    %157 = arith.mulf %150, %156 : vector<2x64xf32>
    %158 = vector.extract_strided_slice %28 {offsets = [0, 6, 0], sizes = [2, 1, 256], strides = [1, 1, 1]} : vector<2x8x256xf32> to vector<2x1x256xf32>
    %159 = vector.shape_cast %158 : vector<2x1x256xf32> to vector<2x256xf32>
    %160 = arith.truncf %157 : vector<2x64xf32> to vector<2x64xbf16>
    %cst_29 = arith.constant dense<0.000000e+00> : vector<2x256xf32>
    %161 = tpu.matmul %160, %29, %cst_29 {dimension_numbers = #tpu.dot_dimension_numbers<[1], [0], [0], [1], [0, 0, 1, 1], [], []>} : vector<2x64xbf16>, vector<64x256xbf16>, vector<2x256xf32> -> vector<2x256xf32>
    %162 = arith.addf %159, %161 : vector<2x256xf32>
    %163 = vector.extract_strided_slice %162 {offsets = [0, 0], sizes = [2, 192], strides = [1, 1]} : vector<2x256xf32> to vector<2x192xf32>
    %164 = arith.negf %163 : vector<2x192xf32>
    %165 = math.exp %164 : vector<2x192xf32>
    %cst_30 = arith.constant 1.000000e+00 : f32
    %166 = vector.broadcast %cst_30 : f32 to vector<2x192xf32>
    %167 = arith.addf %166, %165 : vector<2x192xf32>
    %168 = arith.divf %166, %167 : vector<2x192xf32>
    %169 = vector.extract_strided_slice %168 {offsets = [0, 0], sizes = [2, 64], strides = [1, 1]} : vector<2x192xf32> to vector<2x64xf32>
    %170 = vector.extract_strided_slice %168 {offsets = [0, 64], sizes = [2, 64], strides = [1, 1]} : vector<2x192xf32> to vector<2x64xf32>
    %171 = vector.extract_strided_slice %168 {offsets = [0, 128], sizes = [2, 64], strides = [1, 1]} : vector<2x192xf32> to vector<2x64xf32>
    %172 = vector.extract_strided_slice %162 {offsets = [0, 192], sizes = [2, 64], strides = [1, 1]} : vector<2x256xf32> to vector<2x64xf32>
    %173 = math.tanh %172 : vector<2x64xf32>
    %174 = arith.mulf %170, %155 : vector<2x64xf32>
    %175 = arith.mulf %169, %173 : vector<2x64xf32>
    %176 = arith.addf %174, %175 : vector<2x64xf32>
    %177 = math.tanh %176 : vector<2x64xf32>
    %178 = arith.mulf %171, %177 : vector<2x64xf32>
    %179 = vector.extract_strided_slice %28 {offsets = [0, 7, 0], sizes = [2, 1, 256], strides = [1, 1, 1]} : vector<2x8x256xf32> to vector<2x1x256xf32>
    %180 = vector.shape_cast %179 : vector<2x1x256xf32> to vector<2x256xf32>
    %181 = arith.truncf %178 : vector<2x64xf32> to vector<2x64xbf16>
    %cst_31 = arith.constant dense<0.000000e+00> : vector<2x256xf32>
    %182 = tpu.matmul %181, %29, %cst_31 {dimension_numbers = #tpu.dot_dimension_numbers<[1], [0], [0], [1], [0, 0, 1, 1], [], []>} : vector<2x64xbf16>, vector<64x256xbf16>, vector<2x256xf32> -> vector<2x256xf32>
    %183 = arith.addf %180, %182 : vector<2x256xf32>
    %184 = vector.extract_strided_slice %183 {offsets = [0, 0], sizes = [2, 192], strides = [1, 1]} : vector<2x256xf32> to vector<2x192xf32>
    %185 = arith.negf %184 : vector<2x192xf32>
    %186 = math.exp %185 : vector<2x192xf32>
    %cst_32 = arith.constant 1.000000e+00 : f32
    %187 = vector.broadcast %cst_32 : f32 to vector<2x192xf32>
    %188 = arith.addf %187, %186 : vector<2x192xf32>
    %189 = arith.divf %187, %188 : vector<2x192xf32>
    %190 = vector.extract_strided_slice %189 {offsets = [0, 0], sizes = [2, 64], strides = [1, 1]} : vector<2x192xf32> to vector<2x64xf32>
    %191 = vector.extract_strided_slice %189 {offsets = [0, 64], sizes = [2, 64], strides = [1, 1]} : vector<2x192xf32> to vector<2x64xf32>
    %192 = vector.extract_strided_slice %189 {offsets = [0, 128], sizes = [2, 64], strides = [1, 1]} : vector<2x192xf32> to vector<2x64xf32>
    %193 = vector.extract_strided_slice %183 {offsets = [0, 192], sizes = [2, 64], strides = [1, 1]} : vector<2x256xf32> to vector<2x64xf32>
    %194 = math.tanh %193 : vector<2x64xf32>
    %195 = arith.mulf %191, %176 : vector<2x64xf32>
    %196 = arith.mulf %190, %194 : vector<2x64xf32>
    %197 = arith.addf %195, %196 : vector<2x64xf32>
    %198 = math.tanh %197 : vector<2x64xf32>
    %199 = arith.mulf %192, %198 : vector<2x64xf32>
    %200 = tpu.concatenate %52, %73, %94, %115, %136, %157, %178, %199 in 1 : vector<2x64xf32>, vector<2x64xf32>, vector<2x64xf32>, vector<2x64xf32>, vector<2x64xf32>, vector<2x64xf32>, vector<2x64xf32>, vector<2x64xf32> -> vector<2x512xf32>
    %c0_33 = arith.constant 0 : index
    %c0_34 = arith.constant 0 : index
    %201 = vector.load %arg5[%c0_33, %c0_34] : memref<512x128xf32, #tpu.memory_space<vmem>>, vector<512x128xf32>
    %cst_35 = arith.constant dense<0.000000e+00> : vector<2x128xf32>
    %202 = tpu.matmul %200, %201, %cst_35 {dimension_numbers = #tpu.dot_dimension_numbers<[1], [0], [0], [1], [0, 0, 1, 1], [], []>} : vector<2x512xf32>, vector<512x128xf32>, vector<2x128xf32> -> vector<2x128xf32>
    %c0_36 = arith.constant 0 : index
    %c0_37 = arith.constant 0 : index
    %203 = vector.load %arg6[%c0_36, %c0_37] : memref<1x128xf32, #tpu.memory_space<vmem>>, vector<1x128xf32>
    %204 = vector.broadcast %203 : vector<1x128xf32> to vector<2x128xf32>
    %205 = arith.addf %202, %204 : vector<2x128xf32>
    %206 = arith.addf %0, %205 : vector<2x128xf32>
    %c0_38 = arith.constant 0 : index
    %c0_39 = arith.constant 0 : index
    %207 = vector.load %arg7[%c0_38, %c0_39] : memref<2x128xf32, #tpu.memory_space<vmem>>, vector<2x128xf32>
    tpu.vector_store %arg7[%c0_38, %c0_39], %206 {strides = array<i32>} : memref<2x128xf32, #tpu.memory_space<vmem>>, vector<2x128xf32>,
    return
  }
}

</mosaic_0001>

<bundles_post_ra>
// kernel: resrnn_pallas.1
= control target key start
LH: loop header
LB: loop body
LE: loop exit
PB: predicated region body
PF: predicated region fallthrough
CT: control target
= control target key end

     0   :  { %vm28_vm0 = vcmask 1041408   ;;  %v1964_v14 = vmov 0.0   ;;  %v1965_v28 = vmov 0   ;;  %v45_v29 = vlaneseq  ;;  %s1966_s16 = smov 64   ;;  %s2572_s0 = inlined_call_operand.vmem [shape: f32[2,128], index: 0, kind: input, shape index: {}]   ;;  %s2573_s4 = inlined_call_operand.vmem [shape: bf16[64,256], index: 4, kind: input, shape index: {}]   ;;  %s2574_s2 = inlined_call_operand.vmem [shape: f32[32,256], index: 2, kind: input, shape index: {}]   ;;  %s2575_s1 = inlined_call_operand.vmem [shape: f32[2,8,32], index: 1, kind: input, shape index: {}]   ;;  %s2576_s3 = inlined_call_operand.vmem [shape: f32[1,256], index: 3, kind: input, shape index: {}]   ;;  %s2577_s5 = inlined_call_operand.vmem [shape: f32[512,128], index: 5, kind: input, shape index: {}]   ;;  %s2578_s6 = inlined_call_operand.vmem [shape: f32[1,128], index: 6, kind: input, shape index: {}]   ;;  %s2579_s7 = inlined_call_operand.vmem [shape: f32[2,128], index: 7, kind: output, shape index: {}]  }
   0x1   :  { %v27_v0 = vld [vmem:[%s2572_s0] sm:$0x3]  ;;  %v2016_v7 = vld [vmem:[%s2573_s4 + $0x4] ss:$8 sps:$4 sm:$0xff]   ;;  %v2027_v9 = vld [vmem:[%s2573_s4 + $0x14] ss:$8 sps:$4 sm:$0xff]   ;;  %161 = vmatprep.mubr.f32.mxu0 %v1964_v14  ;;  %258 = vmatprep.mubr.bf16.mxu1 %v1965_v28 }
   0x2   :  { %v29_v1 = vsel %vm28_vm0, %v27_v0, 0.0  ;;  %v2021_v8 = vld [vmem:[%s2573_s4] ss:$8 sps:$4 sm:$0xff]   ;;  %226 = vmatprep.subr.bf16.mxu1 %v2016_v7  ;;  %v2032_v10 = vld [vmem:[%s2573_s4 + $0x10] ss:$8 sps:$4 sm:$0xff]   ;;  %v46_v33 = vshrl.u32 %v45_v29, 7 }
   0x3   :  { %30 = vadd.xlane.f32.xlu0 %v29_v1  ;;  %227 = vmatpush1.bf16.msra.mxu1 %v2021_v8  ;;  %v71_v11 = vld [vmem:[%s2574_s2 + $0x8] sm:$0xff]  ;;  %v73_v12 = vld [vmem:[%s2574_s2 + $0x18] sm:$0xff]  ;;  %v70_v13 = vld [vmem:[%s2574_s2] sm:$0xff]  ;;  %vm90_vm1 = vcmask 261120   ;;  %vm346_vm2 = vcmask 1041409   ;;  %vm222_vm3 = vcmask 523264  }
   0x4   :  { %228 = vmatprep.subr.bf16.mxu1 %v2027_v9  ;;  %v1669_v15 = vpack.c.bf16 %v73_v12, %v71_v11  ;;  %v72_v16 = vld [vmem:[%s2574_s2 + $0x10] sm:$0xff]  ;;  %v2051_v17 = vld [vmem:[%s2573_s4 + $0x24] ss:$8 sps:$4 sm:$0xff]   ;;  %v77_v20 = vld [vmem:[%s2574_s2 + $0x38] sm:$0xff]  ;;  %v47_v34 = vsub.s32 0, %v46_v33  ;;  %v51_v35 = vsub.s32 1, %v46_v33 }
   0x5   :  { %v1671_v18 = vpack.c.bf16 %v72_v16, %v70_v13  ;;  %v75_v19 = vld [vmem:[%s2574_s2 + $0x28] sm:$0xff]  ;;  %v74_v22 = vld [vmem:[%s2574_s2 + $0x20] sm:$0xff]  ;;  %v76_v23 = vld [vmem:[%s2574_s2 + $0x30] sm:$0xff] }
   0x6   :  { %1670 = vmatprep.subr.bf16.mxu0 %v1669_v15  ;;  %v1673_v21 = vpack.c.bf16 %v77_v20, %v75_v19  ;;  %v2069_v24 = vld [vmem:[%s2573_s4 + $0x20] ss:$8 sps:$4 sm:$0xff]   ;;  %v1675_v25 = vpack.c.bf16 %v76_v23, %v74_v22  ;;  %v2075_v26 = vld [vmem:[%s2573_s4 + $0x34] ss:$8 sps:$4 sm:$0xff]   ;;  %v2081_v27 = vld [vmem:[%s2573_s4 + $0x30] ss:$8 sps:$4 sm:$0xff]  }
   0x7   :  { %229 = vmatpush1.bf16.msra.mxu1 %v2032_v10  ;;  %1672 = vmatpush1.bf16.msra.mxu0 %v1671_v18  ;;  %v42_v37 = vld [vmem:[%s2575_s1] sm:$0xff]  ;;  %v43_v42 = vld [vmem:[%s2575_s1 + $0x8] sm:$0xff] }
   0x8   :  { %230 = vmatprep.subr.bf16.mxu1 %v2051_v17  ;;  %1674 = vmatprep.subr.bf16.mxu0 %v1673_v21  ;;  %v78_v51 = vld [vmem:[%s2576_s3] sm:$0x3] }
   0x9   :  { %v87_v54 = vrot.slane %v78_v51, %v51_v35 }
   0xb   :  { %231 = vmatpush1.bf16.msra.mxu1 %v2069_v24  ;;  %1676 = vmatpush1.bf16.msra.mxu0 %v1675_v25 }
   0xc   :  { %232 = vmatprep.subr.bf16.mxu1 %v2075_v26  ;;  %352 = vmatprep.subr.bf16.mxu0 %v2016_v7 }
   0xf   :  { %233 = vmatpush1.bf16.msra.mxu1 %v2081_v27 }
  0x10   :  { %483 = vmatprep.subr.bf16.mxu1 %v2016_v7 }
  0x12   :  { %259 = vmatmul.mubr.bf16.vlgmr.msra.gmra.mrb[0].mxu1 %v1965_v28 }
  0x13   :  { %484 = vmatpush1.bf16.msra.mxu1 %v2021_v8  ;;  %515 = vmatprep.mubr.bf16.mxu1 %v1965_v28 }
  0x14   :  { %485 = vmatprep.subr.bf16.mxu1 %v2027_v9 }
  0x17   :  { %486 = vmatpush1.bf16.msra.mxu1 %v2032_v10 }
  0x18   :  { %487 = vmatprep.subr.bf16.mxu1 %v2051_v17 }
  0x1b   :  { %488 = vmatpush1.bf16.msra.mxu1 %v2069_v24 }
  0x1c   :  { %489 = vmatprep.subr.bf16.mxu1 %v2075_v26 }
  0x1f   :  { %490 = vmatpush1.bf16.msra.mxu1 %v2081_v27 }
  0x20   :  { %751 = vmatprep.subr.bf16.mxu1 %v2016_v7 }
  0x90   :  { %v31_v2 = vpop.xlane.xlu0 %30 }
  0x91   :  { %v2010_v3 = vmul.f32 0.0078125, %v31_v2 }
  0x93   :  { %v34_v4 = vsub.f32 %v27_v0, %v2010_v3  ;;  %v48_v36 = vrot.slane %v2010_v3, %v47_v34  ;;  %v52_v39 = vrot.slane %v2010_v3, %v51_v35  ;;  %v83_v0 = vrot.slane %v78_v51, %v47_v34 }
  0x95   :  { %v35_v5 = vmul.f32 %v34_v4, %v34_v4  ;;  %v55_v40 = vsub.f32 %v42_v37, %v48_v36  ;;  %v56_v45 = vsub.f32 %v43_v42, %v52_v39 }
  0x97   :  { %v36_v6 = vsel %vm28_vm0, %v35_v5, 0.0 }
  0x98   :  { %37 = vadd.xlane.f32.xlu0 %v36_v6 }
  0xe5   :  { %v260_v47 = vpop.f32.mrb[0].mxu1 }
  0xe6   :  { %v262_v48 = vpop.f32.mrb[1].mxu1  ;;  %v269_v1 = vrot.slane %v260_v47, 1 }
  0xe7   :  { %v264_v49 = vpop.f32.mrb[2].mxu1  ;;  %v270_v55 = vrot.slane %v262_v48, 1 }
  0xe8   :  { %v265_v50 = vpop.f32.mrb[3].mxu1 }
 0x125   :  { %v38_v30 = vpop.xlane.xlu0 %37 }
 0x126   :  { %v39_v31 = vmul.f32 0.0078125, %v38_v30 }
 0x128   :  { %v40_v32 = vadd.f32 1.1920929e-07, %v39_v31 }
 0x12a   :  { %1766 = vrsqrt.f32 %v40_v32 }
 0x134   :  { %v1767_v38 = vpop.eup %1766 }
 0x135   :  { %v61_v41 = vrot.slane %v1767_v38, %v47_v34  ;;  %v65_v44 = vrot.slane %v1767_v38, %v51_v35 }
 0x137   :  { %v68_v43 = vmul.f32 %v61_v41, %v55_v40  ;;  %v69_v46 = vmul.f32 %v65_v44, %v56_v45 }
 0x139   :  { %1549 = vmatmul.mubr.msk.f32.vlgmr.msra.gmra.mrb[0].mxu0 %vm90_vm1, %v68_v43 }
 0x13a   :  { %167 = vmatprep.mubr.f32.mxu0 %v1964_v14  ;;  %353 = vmatpush1.bf16.msra.mxu0 %v2021_v8 }
 0x13b   :  { %354 = vmatprep.subr.bf16.mxu0 %v2027_v9 }
 0x13d   :  { %1550 = vmatmul.mubr.msk.f32.gmra.mrb[2].mxu0 %vm90_vm1, %v69_v46 }
 0x13e   :  { %355 = vmatpush1.bf16.msra.mxu0 %v2032_v10  ;;  %384 = vmatprep.mubr.bf16.mxu0 %v1965_v28 }
 0x13f   :  { %356 = vmatprep.subr.bf16.mxu0 %v2051_v17 }
 0x142   :  { %357 = vmatpush1.bf16.msra.mxu0 %v2069_v24 }
 0x143   :  { %358 = vmatprep.subr.bf16.mxu0 %v2075_v26 }
 0x146   :  { %359 = vmatpush1.bf16.msra.mxu0 %v2081_v27 }
 0x147   :  { %617 = vmatprep.subr.bf16.mxu0 %v2016_v7 }
 0x20c   :  { %v163_v52 = vpop.f32.mrb[0].mxu0 }
 0x20d   :  { %v165_v53 = vpop.f32.mrb[1].mxu0  ;;  %v2128_v3 = vadd.f32 %v163_v52, %v83_v0 }
 0x20e   :  { %v2118_v58 = vadd.f32 %v165_v53, %v87_v54 }
 0x20f   :  { %v275_v5 = vadd.f32 %v260_v47, %v2128_v3 }
 0x210   :  { %v169_v56 = vpop.f32.mrb[2].mxu0  ;;  %v276_v61 = vadd.f32 %v262_v48, %v2118_v58 }
 0x211   :  { %v171_v57 = vpop.f32.mrb[3].mxu0  ;;  %v2126_v2 = vadd.f32 %v169_v56, %v83_v0  ;;  %v1559_v11 = vmul.f32 -1.442695, %v275_v5 }
 0x212   :  { %v2120_v59 = vadd.f32 %v171_v57, %v87_v54  ;;  %v1560_v36 = vmul.f32 -1.442695, %v276_v61 }
 0x213   :  { %v277_v4 = vadd.f32 %v269_v1, %v2126_v2 }
 0x214   :  { %v278_v60 = vadd.f32 %v270_v55, %v2120_v59 }
 0x215   :  { %v1561_v6 = vmul.f32 -1.442695, %v277_v4 }
 0x216   :  { %1768 = vtanh.f32 %v278_v60  ;;  %v1562_v35 = vmul.f32 -1.442695, %v278_v60 }
 0x217   :  { %1770 = vtanh.f32 %v276_v61 }
 0x218   :  { %1772 = vpow2.f32 %v1561_v6 }
 0x219   :  { %1774 = vpow2.f32 %v1559_v11 }
 0x220   :  { %v1769_v62 = vpop.eup %1768 }
 0x221   :  { %311 = vrot.lane.b32.xlu1 %v1769_v62, %s1966_s16  ;;  %v1771_v63 = vpop.eup %1770 }
 0x222   :  { %v1773_v12 = vpop.eup %1772 }
 0x223   :  { %v293_v13 = vadd.f32 1.0, %v1773_v12  ;;  %v1775_v14 = vpop.eup %1774 }
 0x224   :  { %v291_v15 = vadd.f32 1.0, %v1775_v14 }
 0x225   :  { %309 = vrot.lane.b32.xlu1 %v1771_v63, %s1966_s16  ;;  %1776 = vrcp.f32 %v293_v13 }
 0x226   :  { %1778 = vrcp.f32 %v291_v15 }
 0x22f   :  { %v1777_v16 = vpop.eup %1776 }
 0x230   :  { %v1779_v20 = vpop.eup %1778  ;;  %v306_v23 = vmul.f32 0.0, %v1777_v16 }
 0x231   :  { %v305_v30 = vmul.f32 0.0, %v1779_v20 }
 0x293   :  { %v312_v18 = vpop.permute.xlu1 %311 }
 0x294   :  { %v316_v19 = vmul.f32 %v1777_v16, %v312_v18 }
 0x296   :  { %321 = vrot.lane.b32.xlu0 %v316_v19, %s1966_s16 }
 0x297   :  { %v310_v21 = vpop.permute.xlu1 %309 }
 0x298   :  { %v315_v22 = vmul.f32 %v1779_v20, %v310_v21 }
 0x29a   :  { %319 = vrot.lane.b32.xlu1 %v315_v22, %s1966_s16 }
 0x308   :  { %v322_v25 = vpop.permute.xlu0 %321 }
 0x309   :  { %v2134_v29 = vadd.f32 %v322_v25, %v306_v23 }
 0x30b   :  { %1780 = vtanh.f32 %v2134_v29 }
 0x30c   :  { %v320_v31 = vpop.permute.xlu1 %319 }
 0x30d   :  { %v2137_v32 = vadd.f32 %v320_v31, %v305_v30 }
 0x30f   :  { %1782 = vtanh.f32 %v2137_v32  ;;  %v433_v30 = vrot.slane %v2137_v32, 7 }
 0x310   :  { %1784 = vpow2.f32 %v1562_v35 }
 0x311   :  { %1786 = vpow2.f32 %v1560_v36 }
 0x315   :  { %v1781_v33 = vpop.eup %1780 }
 0x316   :  { %333 = vrot.lane.b32.xlu1 %v1781_v33, %s1966_s16 }
 0x319   :  { %v1783_v34 = vpop.eup %1782 }
 0x31a   :  { %331 = vrot.lane.b32.xlu1 %v1783_v34, %s1966_s16  ;;  %v1785_v37 = vpop.eup %1784  ;;  %v434_v34 = vrot.slane %v2134_v29, 7 }
 0x31b   :  { %v294_v38 = vadd.f32 1.0, %v1785_v37  ;;  %v1787_v39 = vpop.eup %1786 }
 0x31c   :  { %v292_v40 = vadd.f32 1.0, %v1787_v39 }
 0x31d   :  { %1788 = vrcp.f32 %v294_v38 }
 0x31e   :  { %1790 = vrcp.f32 %v292_v40 }
 0x327   :  { %v1789_v41 = vpop.eup %1788 }
 0x328   :  { %v1791_v45 = vpop.eup %1790 }
 0x388   :  { %v334_v42 = vpop.permute.xlu1 %333 }
 0x389   :  { %v338_v43 = vmul.f32 %v1789_v41, %v334_v42 }
 0x38b   :  { %v340_v44 = vpack.c.bf16 %v338_v43, %v338_v43  ;;  %v1276_v48 = vrot.slane %v338_v43, 7 }
 0x38c   :  { %v332_v46 = vpop.permute.xlu1 %331 }
 0x38d   :  { %v344_v47 = vunpack.c.l.b16 %v340_v44  ;;  %v337_v49 = vmul.f32 %v1791_v45, %v332_v46 }
 0x38f   :  { %v339_v50 = vpack.c.bf16 %v337_v49, %v337_v49  ;;  %v2143_v51 = vsel %vm346_vm2, %v1276_v48, %v337_v49  ;;  %v345_v52 = vrot.slane %v344_v47, 7 }
 0x391   :  { %v343_v53 = vunpack.c.l.b16 %v339_v50 }
 0x393   :  { %v347_v54 = vsel %vm346_vm2, %v345_v52, %v343_v53 }
 0x394   :  { %v348_v55 = vpack.c.b16 %v347_v54, %v347_v54 }
 0x396   :  { %1563 = vmatmul.mubr.msk.bf16.vlgmr.msra.gmra.mrb[4].mxu0 %vm222_vm3, %v348_v55 }
 0x397   :  { %618 = vmatpush1.bf16.msra.mxu0 %v2021_v8  ;;  %649 = vmatprep.mubr.bf16.mxu0 %v1965_v28 }
 0x398   :  { %619 = vmatprep.subr.bf16.mxu0 %v2027_v9 }
 0x39b   :  { %620 = vmatpush1.bf16.msra.mxu0 %v2032_v10 }
 0x39c   :  { %621 = vmatprep.subr.bf16.mxu0 %v2051_v17 }
 0x39f   :  { %622 = vmatpush1.bf16.msra.mxu0 %v2069_v24 }
 0x3a0   :  { %623 = vmatprep.subr.bf16.mxu0 %v2075_v26 }
 0x3a3   :  { %624 = vmatpush1.bf16.msra.mxu0 %v2081_v27 }
 0x3a4   :  { %885 = vmatprep.subr.bf16.mxu0 %v2016_v7 }
 0x469   :  { %v386_v56 = vpop.f32.mrb[4].mxu0 }
 0x46a   :  { %v388_v57 = vpop.f32.mrb[5].mxu0  ;;  %v395_v5 = vrot.slane %v386_v56, 7  ;;  %v403_v11 = vadd.f32 %v386_v56, %v2126_v2 }
 0x46b   :  { %v396_v60 = vrot.slane %v388_v57, 7  ;;  %v390_v61 = vpop.f32.mrb[6].mxu0  ;;  %v404_v0 = vadd.f32 %v388_v57, %v2120_v59 }
 0x46c   :  { %v391_v62 = vpop.f32.mrb[7].mxu0  ;;  %v401_v6 = vadd.f32 %v395_v5, %v2128_v3  ;;  %v1566_v13 = vmul.f32 -1.442695, %v403_v11 }
 0x46d   :  { %v402_v63 = vadd.f32 %v396_v60, %v2118_v58  ;;  %v1567_v41 = vmul.f32 -1.442695, %v404_v0 }
 0x46e   :  { %v1564_v12 = vmul.f32 -1.442695, %v401_v6 }
 0x46f   :  { %1792 = vtanh.f32 %v402_v63  ;;  %v1565_v32 = vmul.f32 -1.442695, %v402_v63 }
 0x470   :  { %1794 = vtanh.f32 %v404_v0 }
 0x471   :  { %1796 = vpow2.f32 %v1564_v12 }
 0x472   :  { %1798 = vpow2.f32 %v1566_v13 }
 0x479   :  { %v1793_v1 = vpop.eup %1792 }
 0x47a   :  { %441 = vrot.lane.b32.xlu1 %v1793_v1, %s1966_s16  ;;  %v1795_v4 = vpop.eup %1794 }
 0x47b   :  { %v1797_v14 = vpop.eup %1796 }
 0x47c   :  { %v417_v15 = vadd.f32 1.0, %v1797_v14  ;;  %v1799_v16 = vpop.eup %1798 }
 0x47d   :  { %v419_v18 = vadd.f32 1.0, %v1799_v16 }
 0x47e   :  { %443 = vrot.lane.b32.xlu1 %v1795_v4, %s1966_s16  ;;  %1800 = vrcp.f32 %v417_v15 }
 0x47f   :  { %1802 = vrcp.f32 %v419_v18 }
 0x488   :  { %v1801_v19 = vpop.eup %1800 }
 0x489   :  { %v1803_v22 = vpop.eup %1802  ;;  %v437_v31 = vmul.f32 %v1801_v19, %v433_v30 }
 0x48a   :  { %v438_v36 = vmul.f32 %v1803_v22, %v434_v34 }
 0x4ec   :  { %v442_v20 = vpop.permute.xlu1 %441 }
 0x4ed   :  { %v447_v21 = vmul.f32 %v1801_v19, %v442_v20 }
 0x4ef   :  { %451 = vrot.lane.b32.xlu1 %v447_v21, %s1966_s16 }
 0x4f0   :  { %v444_v23 = vpop.permute.xlu1 %443 }
 0x4f1   :  { %v448_v25 = vmul.f32 %v1803_v22, %v444_v23 }
 0x4f3   :  { %453 = vrot.lane.b32.xlu0 %v448_v25, %s1966_s16 }
 0x561   :  { %v452_v33 = vpop.permute.xlu1 %451 }
 0x562   :  { %v2166_v35 = vadd.f32 %v452_v33, %v437_v31 }
 0x564   :  { %1804 = vtanh.f32 %v2166_v35 }
 0x565   :  { %v454_v37 = vpop.permute.xlu0 %453 }
 0x566   :  { %v2169_v38 = vadd.f32 %v454_v37, %v438_v36 }
 0x568   :  { %1806 = vtanh.f32 %v2169_v38 }
 0x569   :  { %1808 = vpow2.f32 %v1565_v32 }
 0x56a   :  { %1810 = vpow2.f32 %v1567_v41 }
 0x56e   :  { %v1805_v39 = vpop.eup %1804 }
 0x56f   :  { %463 = vrot.lane.b32.xlu1 %v1805_v39, %s1966_s16 }
 0x572   :  { %v1807_v40 = vpop.eup %1806 }
 0x573   :  { %465 = vrot.lane.b32.xlu0 %v1807_v40, %s1966_s16  ;;  %v1809_v29 = vpop.eup %1808  ;;  %v566_v40 = vrot.slane %v2166_v35, 7 }
 0x574   :  { %v418_v42 = vadd.f32 1.0, %v1809_v29  ;;  %v1811_v43 = vpop.eup %1810 }
 0x575   :  { %v420_v44 = vadd.f32 1.0, %v1811_v43 }
 0x576   :  { %1812 = vrcp.f32 %v418_v42  ;;  %v567_v42 = vrot.slane %v2169_v38, 7 }
 0x577   :  { %1814 = vrcp.f32 %v420_v44 }
 0x580   :  { %v1813_v45 = vpop.eup %1812 }
 0x581   :  { %v1815_v49 = vpop.eup %1814 }
 0x5e1   :  { %v464_v46 = vpop.permute.xlu1 %463 }
 0x5e2   :  { %v469_v47 = vmul.f32 %v1813_v45, %v464_v46 }
 0x5e4   :  { %v471_v48 = vpack.c.bf16 %v469_v47, %v469_v47  ;;  %v1281_v53 = vrot.slane %v469_v47, 1 }
 0x5e5   :  { %v466_v50 = vpop.permute.xlu0 %465 }
 0x5e6   :  { %v475_v52 = vunpack.c.l.b16 %v471_v48  ;;  %v470_v54 = vmul.f32 %v1815_v49, %v466_v50 }
 0x5e8   :  { %v472_v55 = vpack.c.bf16 %v470_v54, %v470_v54  ;;  %v2175_v56 = vsel %vm346_vm2, %v470_v54, %v1281_v53  ;;  %v477_v57 = vrot.slane %v475_v52, 1 }
 0x5ea   :  { %v476_v60 = vunpack.c.l.b16 %v472_v55 }
 0x5ec   :  { %v478_v61 = vsel %vm346_vm2, %v476_v60, %v477_v57 }
 0x5ed   :  { %v479_v62 = vpack.c.b16 %v478_v61, %v478_v61 }
 0x5ef   :  { %1568 = vmatmul.mubr.msk.bf16.vlgmr.msra.gmra.mrb[4].mxu1 %vm222_vm3, %v479_v62 }
 0x5f0   :  { %752 = vmatpush1.bf16.msra.mxu1 %v2021_v8  ;;  %783 = vmatprep.mubr.bf16.mxu1 %v1965_v28 }
 0x5f1   :  { %753 = vmatprep.subr.bf16.mxu1 %v2027_v9 }
 0x5f4   :  { %754 = vmatpush1.bf16.msra.mxu1 %v2032_v10 }
 0x5f5   :  { %755 = vmatprep.subr.bf16.mxu1 %v2051_v17 }
 0x5f8   :  { %756 = vmatpush1.bf16.msra.mxu1 %v2069_v24 }
 0x5f9   :  { %757 = vmatprep.subr.bf16.mxu1 %v2075_v26 }
 0x5fc   :  { %758 = vmatpush1.bf16.msra.mxu1 %v2081_v27 }
 0x5fd   :  { %1019 = vmatprep.subr.bf16.mxu1 %v2016_v7 }
 0x6c2   :  { %v517_v63 = vpop.f32.mrb[4].mxu1 }
 0x6c3   :  { %v519_v0 = vpop.f32.mrb[5].mxu1  ;;  %v526_v15 = vrot.slane %v517_v63, 6  ;;  %v528_v18 = vrot.slane %v517_v63, 7 }
 0x6c4   :  { %v527_v1 = vrot.slane %v519_v0, 6  ;;  %v521_v4 = vpop.f32.mrb[6].mxu1  ;;  %v529_v5 = vrot.slane %v519_v0, 7 }
 0x6c5   :  { %v522_v6 = vpop.f32.mrb[7].mxu1  ;;  %v534_v16 = vadd.f32 %v526_v15, %v2128_v3  ;;  %v536_v20 = vadd.f32 %v528_v18, %v2126_v2 }
 0x6c6   :  { %v535_v11 = vadd.f32 %v527_v1, %v2118_v58  ;;  %v537_v12 = vadd.f32 %v529_v5, %v2120_v59 }
 0x6c7   :  { %v1569_v19 = vmul.f32 -1.442695, %v534_v16  ;;  %v1571_v21 = vmul.f32 -1.442695, %v536_v20 }
 0x6c8   :  { %1816 = vtanh.f32 %v535_v11  ;;  %v1570_v35 = vmul.f32 -1.442695, %v535_v11  ;;  %v1572_v48 = vmul.f32 -1.442695, %v537_v12 }
 0x6c9   :  { %1818 = vtanh.f32 %v537_v12 }
 0x6ca   :  { %1820 = vpow2.f32 %v1569_v19 }
 0x6cb   :  { %1822 = vpow2.f32 %v1571_v21 }
 0x6d2   :  { %v1817_v13 = vpop.eup %1816 }
 0x6d3   :  { %574 = vrot.lane.b32.xlu1 %v1817_v13, %s1966_s16  ;;  %v1819_v14 = vpop.eup %1818 }
 0x6d4   :  { %576 = vrot.lane.b32.xlu0 %v1819_v14, %s1966_s16  ;;  %v1821_v22 = vpop.eup %1820 }
 0x6d5   :  { %v550_v23 = vadd.f32 1.0, %v1821_v22  ;;  %v1823_v25 = vpop.eup %1822 }
 0x6d6   :  { %v552_v30 = vadd.f32 1.0, %v1823_v25 }
 0x6d7   :  { %1824 = vrcp.f32 %v550_v23 }
 0x6d8   :  { %1826 = vrcp.f32 %v552_v30 }
 0x6e1   :  { %v1825_v31 = vpop.eup %1824 }
 0x6e2   :  { %v1827_v36 = vpop.eup %1826  ;;  %v570_v32 = vmul.f32 %v1825_v31, %v566_v40 }
 0x6e3   :  { %v571_v43 = vmul.f32 %v1827_v36, %v567_v42 }
 0x745   :  { %v575_v33 = vpop.permute.xlu1 %574 }
 0x746   :  { %v580_v34 = vmul.f32 %v1825_v31, %v575_v33  ;;  %v577_v37 = vpop.permute.xlu0 %576 }
 0x747   :  { %v581_v39 = vmul.f32 %v1827_v36, %v577_v37 }
 0x748   :  { %584 = vrot.lane.b32.xlu1 %v580_v34, %s1966_s16 }
 0x749   :  { %586 = vrot.lane.b32.xlu0 %v581_v39, %s1966_s16 }
 0x7ba   :  { %v585_v41 = vpop.permute.xlu1 %584 }
 0x7bb   :  { %v2197_v29 = vadd.f32 %v585_v41, %v570_v32  ;;  %v587_v44 = vpop.permute.xlu0 %586 }
 0x7bc   :  { %v2201_v45 = vadd.f32 %v587_v44, %v571_v43 }
 0x7bd   :  { %1828 = vtanh.f32 %v2197_v29 }
 0x7be   :  { %1830 = vtanh.f32 %v2201_v45 }
 0x7bf   :  { %1832 = vpow2.f32 %v1570_v35 }
 0x7c0   :  { %1834 = vpow2.f32 %v1572_v48  ;;  %v700_v48 = vrot.slane %v2197_v29, 7 }
 0x7c7   :  { %v1829_v46 = vpop.eup %1828 }
 0x7c8   :  { %596 = vrot.lane.b32.xlu1 %v1829_v46, %s1966_s16  ;;  %v1831_v47 = vpop.eup %1830 }
 0x7c9   :  { %598 = vrot.lane.b32.xlu0 %v1831_v47, %s1966_s16  ;;  %v1833_v49 = vpop.eup %1832 }
 0x7ca   :  { %v551_v38 = vadd.f32 1.0, %v1833_v49  ;;  %v1835_v50 = vpop.eup %1834 }
 0x7cb   :  { %v553_v52 = vadd.f32 1.0, %v1835_v50 }
 0x7cc   :  { %1836 = vrcp.f32 %v551_v38 }
 0x7cd   :  { %1838 = vrcp.f32 %v553_v52  ;;  %v701_v52 = vrot.slane %v2201_v45, 7 }
 0x7d6   :  { %v1837_v53 = vpop.eup %1836 }
 0x7d7   :  { %v1839_v60 = vpop.eup %1838 }
 0x83a   :  { %v597_v54 = vpop.permute.xlu1 %596 }
 0x83b   :  { %v602_v55 = vmul.f32 %v1837_v53, %v597_v54  ;;  %v599_v61 = vpop.permute.xlu0 %598 }
 0x83c   :  { %v603_v62 = vmul.f32 %v1839_v60, %v599_v61 }
 0x83d   :  { %v604_v57 = vpack.c.bf16 %v602_v55, %v602_v55  ;;  %v1288_v0 = vrot.slane %v602_v55, 2 }
 0x83e   :  { %v605_v1 = vpack.c.bf16 %v603_v62, %v603_v62  ;;  %v1289_v4 = vrot.slane %v603_v62, 1 }
 0x83f   :  { %v608_v63 = vunpack.c.l.b16 %v604_v57 }
 0x840   :  { %v609_v5 = vunpack.c.l.b16 %v605_v1  ;;  %v2207_v11 = vsel %vm346_vm2, %v1289_v4, %v1288_v0 }
 0x841   :  { %v610_v6 = vrot.slane %v608_v63, 2 }
 0x842   :  { %v611_v12 = vrot.slane %v609_v5, 1 }
 0x844   :  { %v612_v13 = vsel %vm346_vm2, %v611_v12, %v610_v6 }
 0x845   :  { %v613_v14 = vpack.c.b16 %v612_v13, %v612_v13 }
 0x847   :  { %1573 = vmatmul.mubr.msk.bf16.vlgmr.msra.gmra.mrb[8].mxu0 %vm222_vm3, %v613_v14 }
 0x848   :  { %886 = vmatpush1.bf16.msra.mxu0 %v2021_v8  ;;  %917 = vmatprep.mubr.bf16.mxu0 %v1965_v28 }
 0x849   :  { %887 = vmatprep.subr.bf16.mxu0 %v2027_v9 }
 0x84c   :  { %888 = vmatpush1.bf16.msra.mxu0 %v2032_v10 }
 0x84d   :  { %889 = vmatprep.subr.bf16.mxu0 %v2051_v17 }
 0x850   :  { %890 = vmatpush1.bf16.msra.mxu0 %v2069_v24 }
 0x851   :  { %891 = vmatprep.subr.bf16.mxu0 %v2075_v26 }
 0x854   :  { %892 = vmatpush1.bf16.msra.mxu0 %v2081_v27 }
 0x855   :  { %1153 = vmatprep.subr.bf16.mxu0 %v2016_v7 }
 0x91a   :  { %v651_v15 = vpop.f32.mrb[8].mxu0 }
 0x91b   :  { %v653_v16 = vpop.f32.mrb[9].mxu0  ;;  %v660_v31 = vrot.slane %v651_v15, 5  ;;  %v662_v33 = vrot.slane %v651_v15, 6 }
 0x91c   :  { %v661_v18 = vrot.slane %v653_v16, 5  ;;  %v655_v19 = vpop.f32.mrb[10].mxu0  ;;  %v663_v20 = vrot.slane %v653_v16, 6 }
 0x91d   :  { %v656_v21 = vpop.f32.mrb[11].mxu0  ;;  %v668_v7 = vadd.f32 %v660_v31, %v2128_v3  ;;  %v670_v36 = vadd.f32 %v662_v33, %v2126_v2 }
 0x91e   :  { %v669_v22 = vadd.f32 %v661_v18, %v2118_v58  ;;  %v671_v23 = vadd.f32 %v663_v20, %v2120_v59 }
 0x91f   :  { %v1574_v34 = vmul.f32 -1.442695, %v668_v7  ;;  %v1576_v37 = vmul.f32 -1.442695, %v670_v36 }
 0x920   :  { %1840 = vtanh.f32 %v669_v22  ;;  %v1575_v29 = vmul.f32 -1.442695, %v669_v22  ;;  %v1577_v61 = vmul.f32 -1.442695, %v671_v23 }
 0x921   :  { %1842 = vtanh.f32 %v671_v23 }
 0x922   :  { %1844 = vpow2.f32 %v1574_v34 }
 0x923   :  { %1846 = vpow2.f32 %v1576_v37 }
 0x92a   :  { %v1841_v25 = vpop.eup %1840 }
 0x92b   :  { %708 = vrot.lane.b32.xlu1 %v1841_v25, %s1966_s16  ;;  %v1843_v30 = vpop.eup %1842 }
 0x92c   :  { %710 = vrot.lane.b32.xlu0 %v1843_v30, %s1966_s16  ;;  %v1845_v39 = vpop.eup %1844 }
 0x92d   :  { %v684_v40 = vadd.f32 1.0, %v1845_v39  ;;  %v1847_v32 = vpop.eup %1846 }
 0x92e   :  { %v686_v41 = vadd.f32 1.0, %v1847_v32 }
 0x92f   :  { %1848 = vrcp.f32 %v684_v40 }
 0x930   :  { %1850 = vrcp.f32 %v686_v41 }
 0x939   :  { %v1849_v42 = vpop.eup %1848 }
 0x93a   :  { %v1851_v46 = vpop.eup %1850  ;;  %v704_v49 = vmul.f32 %v1849_v42, %v700_v48 }
 0x93b   :  { %v705_v53 = vmul.f32 %v1851_v46, %v701_v52 }
 0x99d   :  { %v709_v43 = vpop.permute.xlu1 %708 }
 0x99e   :  { %v714_v44 = vmul.f32 %v1849_v42, %v709_v43  ;;  %v711_v47 = vpop.permute.xlu0 %710 }
 0x99f   :  { %v715_v35 = vmul.f32 %v1851_v46, %v711_v47 }
 0x9a0   :  { %718 = vrot.lane.b32.xlu1 %v714_v44, %s1966_s16 }
 0x9a1   :  { %720 = vrot.lane.b32.xlu0 %v715_v35, %s1966_s16 }
 0xa12   :  { %v719_v38 = vpop.permute.xlu1 %718 }
 0xa13   :  { %v2229_v50 = vadd.f32 %v719_v38, %v704_v49  ;;  %v721_v54 = vpop.permute.xlu0 %720 }
 0xa14   :  { %v2233_v55 = vadd.f32 %v721_v54, %v705_v53 }
 0xa15   :  { %1852 = vtanh.f32 %v2229_v50 }
 0xa16   :  { %1854 = vtanh.f32 %v2233_v55 }
 0xa17   :  { %1856 = vpow2.f32 %v1575_v29  ;;  %v834_v29 = vrot.slane %v2229_v50, 7 }
 0xa18   :  { %1858 = vpow2.f32 %v1577_v61 }
 0xa1f   :  { %v1853_v57 = vpop.eup %1852 }
 0xa20   :  { %730 = vrot.lane.b32.xlu1 %v1853_v57, %s1966_s16  ;;  %v1855_v60 = vpop.eup %1854 }
 0xa21   :  { %732 = vrot.lane.b32.xlu0 %v1855_v60, %s1966_s16  ;;  %v1857_v62 = vpop.eup %1856 }
 0xa22   :  { %v685_v45 = vadd.f32 1.0, %v1857_v62  ;;  %v1859_v63 = vpop.eup %1858 }
 0xa23   :  { %v687_v0 = vadd.f32 1.0, %v1859_v63  ;;  %v835_v63 = vrot.slane %v2233_v55, 7 }
 0xa24   :  { %1860 = vrcp.f32 %v685_v45 }
 0xa25   :  { %1862 = vrcp.f32 %v687_v0 }
 0xa2e   :  { %v1861_v1 = vpop.eup %1860 }
 0xa2f   :  { %v1863_v12 = vpop.eup %1862 }
 0xa92   :  { %v731_v4 = vpop.permute.xlu1 %730 }
 0xa93   :  { %v736_v5 = vmul.f32 %v1861_v1, %v731_v4  ;;  %v733_v13 = vpop.permute.xlu0 %732 }
 0xa94   :  { %v737_v14 = vmul.f32 %v1863_v12, %v733_v13 }
 0xa95   :  { %v738_v6 = vpack.c.bf16 %v736_v5, %v736_v5  ;;  %v1294_v16 = vrot.slane %v736_v5, 3 }
 0xa96   :  { %v739_v18 = vpack.c.bf16 %v737_v14, %v737_v14  ;;  %v1295_v19 = vrot.slane %v737_v14, 2 }
 0xa97   :  { %v742_v15 = vunpack.c.l.b16 %v738_v6 }
 0xa98   :  { %v743_v20 = vunpack.c.l.b16 %v739_v18  ;;  %v2239_v22 = vsel %vm346_vm2, %v1295_v19, %v1294_v16 }
 0xa99   :  { %v744_v21 = vrot.slane %v742_v15, 3  ;;  %v1744_v23 = vpack.i.bf16 %v2175_v56, %v2239_v22  ;;  %v1387_v56 = vld [vmem:[%s2577_s5 + $0x1b8] sm:$0xff] }
 0xa9a   :  { %v745_v25 = vrot.slane %v743_v20, 2 }
 0xa9c   :  { %v746_v30 = vsel %vm346_vm2, %v745_v25, %v744_v21 }
 0xa9d   :  { %v747_v31 = vpack.c.b16 %v746_v30, %v746_v30 }
 0xa9f   :  { %1578 = vmatmul.mubr.msk.bf16.vlgmr.msra.gmra.mrb[8].mxu1 %vm222_vm3, %v747_v31 }
 0xaa0   :  { %1020 = vmatpush1.bf16.msra.mxu1 %v2021_v8  ;;  %1051 = vmatprep.mubr.bf16.mxu1 %v1965_v28 }
 0xaa1   :  { %1021 = vmatprep.subr.bf16.mxu1 %v2027_v9 }
 0xaa4   :  { %1022 = vmatpush1.bf16.msra.mxu1 %v2032_v10 }
 0xaa5   :  { %1023 = vmatprep.subr.bf16.mxu1 %v2051_v17 }
 0xaa8   :  { %1024 = vmatpush1.bf16.msra.mxu1 %v2069_v24 }
 0xaa9   :  { %1025 = vmatprep.subr.bf16.mxu1 %v2075_v26 }
 0xaac   :  { %1026 = vmatpush1.bf16.msra.mxu1 %v2081_v27 }
 0xb72   :  { %v785_v7 = vpop.f32.mrb[8].mxu1 }
 0xb73   :  { %v787_v33 = vpop.f32.mrb[9].mxu1  ;;  %v794_v32 = vrot.slane %v785_v7, 4  ;;  %v796_v42 = vrot.slane %v785_v7, 5 }
 0xb74   :  { %v795_v34 = vrot.slane %v787_v33, 4  ;;  %v789_v36 = vpop.f32.mrb[10].mxu1  ;;  %v797_v37 = vrot.slane %v787_v33, 5 }
 0xb75   :  { %v790_v8 = vpop.f32.mrb[11].mxu1  ;;  %v802_v41 = vadd.f32 %v794_v32, %v2128_v3  ;;  %v804_v44 = vadd.f32 %v796_v42, %v2126_v2  ;;  %v1961_v32 = vld [vmem:[%s2573_s4 + $0x14] ss:$8 sps:$4 sm:$0xff]  }
 0xb76   :  { %v803_v39 = vadd.f32 %v795_v34, %v2118_v58  ;;  %v805_v9 = vadd.f32 %v797_v37, %v2120_v59 }
 0xb77   :  { %v1579_v43 = vmul.f32 -1.442695, %v802_v41  ;;  %v1581_v46 = vmul.f32 -1.442695, %v804_v44  ;;  %v1962_v41 = vld [vmem:[%s2573_s4 + $0x10] ss:$8 sps:$4 sm:$0xff]  }
 0xb78   :  { %1864 = vtanh.f32 %v803_v39  ;;  %v1580_v50 = vmul.f32 -1.442695, %v803_v39  ;;  %v1582_v12 = vmul.f32 -1.442695, %v805_v9 }
 0xb79   :  { %1866 = vtanh.f32 %v805_v9 }
 0xb7a   :  { %1868 = vpow2.f32 %v1579_v43 }
 0xb7b   :  { %1870 = vpow2.f32 %v1581_v46 }
 0xb82   :  { %v1865_v10 = vpop.eup %1864 }
 0xb83   :  { %842 = vrot.lane.b32.xlu1 %v1865_v10, %s1966_s16  ;;  %v1867_v40 = vpop.eup %1866 }
 0xb84   :  { %844 = vrot.lane.b32.xlu0 %v1867_v40, %s1966_s16  ;;  %v1869_v47 = vpop.eup %1868  ;;  %v1960_v40 = vld [vmem:[%s2573_s4] ss:$8 sps:$4 sm:$0xff]  }
 0xb85   :  { %v818_v35 = vadd.f32 1.0, %v1869_v47  ;;  %v1871_v48 = vpop.eup %1870 }
 0xb86   :  { %v820_v49 = vadd.f32 1.0, %v1871_v48 }
 0xb87   :  { %1872 = vrcp.f32 %v818_v35 }
 0xb88   :  { %1874 = vrcp.f32 %v820_v49 }
 0xb91   :  { %v1873_v38 = vpop.eup %1872 }
 0xb92   :  { %v1875_v54 = vpop.eup %1874  ;;  %v838_v61 = vmul.f32 %v1873_v38, %v834_v29 }
 0xb93   :  { %v839_v0 = vmul.f32 %v1875_v54, %v835_v63 }
 0xbf5   :  { %v843_v52 = vpop.permute.xlu1 %842 }
 0xbf6   :  { %v848_v53 = vmul.f32 %v1873_v38, %v843_v52  ;;  %v845_v57 = vpop.permute.xlu0 %844 }
 0xbf7   :  { %v849_v60 = vmul.f32 %v1875_v54, %v845_v57 }
 0xbf8   :  { %852 = vrot.lane.b32.xlu1 %v848_v53, %s1966_s16 }
 0xbf9   :  { %854 = vrot.lane.b32.xlu0 %v849_v60, %s1966_s16 }
 0xc6a   :  { %v853_v62 = vpop.permute.xlu1 %852 }
 0xc6b   :  { %v2262_v45 = vadd.f32 %v853_v62, %v838_v61  ;;  %v855_v1 = vpop.permute.xlu0 %854 }
 0xc6c   :  { %v2266_v4 = vadd.f32 %v855_v1, %v839_v0 }
 0xc6d   :  { %1876 = vtanh.f32 %v2262_v45 }
 0xc6e   :  { %1878 = vtanh.f32 %v2266_v4 }
 0xc6f   :  { %1880 = vpow2.f32 %v1580_v50 }
 0xc70   :  { %1882 = vpow2.f32 %v1582_v12 }
 0xc77   :  { %v1877_v5 = vpop.eup %1876 }
 0xc78   :  { %864 = vrot.lane.b32.xlu1 %v1877_v5, %s1966_s16  ;;  %v1879_v6 = vpop.eup %1878 }
 0xc79   :  { %866 = vrot.lane.b32.xlu0 %v1879_v6, %s1966_s16  ;;  %v1881_v13 = vpop.eup %1880  ;;  %v968_v6 = vrot.slane %v2262_v45, 7 }
 0xc7a   :  { %v819_v55 = vadd.f32 1.0, %v1881_v13  ;;  %v1883_v14 = vpop.eup %1882 }
 0xc7b   :  { %v821_v15 = vadd.f32 1.0, %v1883_v14 }
 0xc7c   :  { %1884 = vrcp.f32 %v819_v55  ;;  %v969_v55 = vrot.slane %v2266_v4, 7 }
 0xc7d   :  { %1886 = vrcp.f32 %v821_v15 }
 0xc86   :  { %v1885_v16 = vpop.eup %1884 }
 0xc87   :  { %v1887_v21 = vpop.eup %1886 }
 0xcea   :  { %v865_v18 = vpop.permute.xlu1 %864 }
 0xceb   :  { %v870_v19 = vmul.f32 %v1885_v16, %v865_v18  ;;  %v867_v25 = vpop.permute.xlu0 %866 }
 0xcec   :  { %v871_v30 = vmul.f32 %v1887_v21, %v867_v25 }
 0xced   :  { %v872_v20 = vpack.c.bf16 %v870_v19, %v870_v19  ;;  %v1302_v7 = vrot.slane %v870_v19, 4 }
 0xcee   :  { %v873_v33 = vpack.c.bf16 %v871_v30, %v871_v30  ;;  %v1303_v34 = vrot.slane %v871_v30, 3 }
 0xcef   :  { %v876_v31 = vunpack.c.l.b16 %v872_v20 }
 0xcf0   :  { %v877_v36 = vunpack.c.l.b16 %v873_v33  ;;  %v2272_v8 = vsel %vm346_vm2, %v1303_v34, %v1302_v7 }
 0xcf1   :  { %v878_v37 = vrot.slane %v876_v31, 4 }
 0xcf2   :  { %v879_v39 = vrot.slane %v877_v36, 3 }
 0xcf4   :  { %v880_v9 = vsel %vm346_vm2, %v879_v39, %v878_v37 }
 0xcf5   :  { %v881_v10 = vpack.c.b16 %v880_v9, %v880_v9 }
 0xcf7   :  { %1583 = vmatmul.mubr.msk.bf16.vlgmr.msra.gmra.mrb[12].mxu0 %vm222_vm3, %v881_v10 }
 0xcf8   :  { %1154 = vmatpush1.bf16.msra.mxu0 %v1960_v40  ;;  %1185 = vmatprep.mubr.bf16.mxu0 %v1965_v28 }
 0xcf9   :  { %1155 = vmatprep.subr.bf16.mxu0 %v1961_v32 }
 0xcfc   :  { %1156 = vmatpush1.bf16.msra.mxu0 %v1962_v41 }
 0xcfd   :  { %1157 = vmatprep.subr.bf16.mxu0 %v2051_v17 }
 0xd00   :  { %1158 = vmatpush1.bf16.msra.mxu0 %v2069_v24 }
 0xd01   :  { %1159 = vmatprep.subr.bf16.mxu0 %v2075_v26 }
 0xd04   :  { %1160 = vmatpush1.bf16.msra.mxu0 %v2081_v27 }
 0xdca   :  { %v919_v42 = vpop.f32.mrb[12].mxu0 }
 0xdcb   :  { %v921_v28 = vpop.f32.mrb[13].mxu0  ;;  %v928_v24 = vrot.slane %v919_v42, 3  ;;  %v930_v27 = vrot.slane %v919_v42, 4 }
 0xdcc   :  { %v929_v43 = vrot.slane %v921_v28, 3  ;;  %v923_v44 = vpop.f32.mrb[14].mxu0  ;;  %v931_v46 = vrot.slane %v921_v28, 4 }
 0xdcd   :  { %v924_v47 = vpop.f32.mrb[15].mxu0  ;;  %v936_v26 = vadd.f32 %v928_v24, %v2128_v3  ;;  %v938_v52 = vadd.f32 %v930_v27, %v2126_v2 }
 0xdce   :  { %v937_v35 = vadd.f32 %v929_v43, %v2118_v58  ;;  %v939_v48 = vadd.f32 %v931_v46, %v2120_v59 }
 0xdcf   :  { %v1584_v38 = vmul.f32 -1.442695, %v936_v26  ;;  %v1586_v53 = vmul.f32 -1.442695, %v938_v52 }
 0xdd0   :  { %1888 = vtanh.f32 %v937_v35  ;;  %v1585_v45 = vmul.f32 -1.442695, %v937_v35  ;;  %v1587_v20 = vmul.f32 -1.442695, %v939_v48 }
 0xdd1   :  { %1890 = vtanh.f32 %v939_v48 }
 0xdd2   :  { %1892 = vpow2.f32 %v1584_v38 }
 0xdd3   :  { %1894 = vpow2.f32 %v1586_v53 }
 0xdda   :  { %v1889_v49 = vpop.eup %1888 }
 0xddb   :  { %976 = vrot.lane.b32.xlu1 %v1889_v49, %s1966_s16  ;;  %v1891_v17 = vpop.eup %1890 }
 0xddc   :  { %978 = vrot.lane.b32.xlu0 %v1891_v17, %s1966_s16  ;;  %v1893_v54 = vpop.eup %1892 }
 0xddd   :  { %v952_v57 = vadd.f32 1.0, %v1893_v54  ;;  %v1895_v60 = vpop.eup %1894 }
 0xdde   :  { %v954_v29 = vadd.f32 1.0, %v1895_v60 }
 0xddf   :  { %1896 = vrcp.f32 %v952_v57 }
 0xde0   :  { %1898 = vrcp.f32 %v954_v29 }
 0xde9   :  { %v1897_v61 = vpop.eup %1896 }
 0xdea   :  { %v1899_v0 = vpop.eup %1898  ;;  %v972_v50 = vmul.f32 %v1897_v61, %v968_v6 }
 0xdeb   :  { %v973_v14 = vmul.f32 %v1899_v0, %v969_v55 }
 0xe4d   :  { %v977_v62 = vpop.permute.xlu1 %976 }
 0xe4e   :  { %v982_v63 = vmul.f32 %v1897_v61, %v977_v62  ;;  %v979_v1 = vpop.permute.xlu0 %978 }
 0xe4f   :  { %v983_v5 = vmul.f32 %v1899_v0, %v979_v1 }
 0xe50   :  { %986 = vrot.lane.b32.xlu1 %v982_v63, %s1966_s16 }
 0xe51   :  { %988 = vrot.lane.b32.xlu0 %v983_v5, %s1966_s16 }
 0xec2   :  { %v987_v12 = vpop.permute.xlu1 %986 }
 0xec3   :  { %v2299_v13 = vadd.f32 %v987_v12, %v972_v50  ;;  %v989_v15 = vpop.permute.xlu0 %988 }
 0xec4   :  { %v2303_v16 = vadd.f32 %v989_v15, %v973_v14 }
 0xec5   :  { %1900 = vtanh.f32 %v2299_v13  ;;  %v1102_v15 = vrot.slane %v2299_v13, 7 }
 0xec6   :  { %1902 = vtanh.f32 %v2303_v16 }
 0xec7   :  { %1904 = vpow2.f32 %v1585_v45 }
 0xec8   :  { %1906 = vpow2.f32 %v1587_v20  ;;  %v1103_v20 = vrot.slane %v2303_v16, 7 }
 0xecf   :  { %v1901_v18 = vpop.eup %1900 }
 0xed0   :  { %998 = vrot.lane.b32.xlu1 %v1901_v18, %s1966_s16  ;;  %v1903_v19 = vpop.eup %1902 }
 0xed1   :  { %1000 = vrot.lane.b32.xlu0 %v1903_v19, %s1966_s16  ;;  %v1905_v21 = vpop.eup %1904 }
 0xed2   :  { %v953_v4 = vadd.f32 1.0, %v1905_v21  ;;  %v1907_v25 = vpop.eup %1906 }
 0xed3   :  { %v955_v30 = vadd.f32 1.0, %v1907_v25 }
 0xed4   :  { %1908 = vrcp.f32 %v953_v4 }
 0xed5   :  { %1910 = vrcp.f32 %v955_v30 }
 0xede   :  { %v1909_v31 = vpop.eup %1908 }
 0xedf   :  { %v1911_v36 = vpop.eup %1910 }
 0xf42   :  { %v999_v7 = vpop.permute.xlu1 %998 }
 0xf43   :  { %v1004_v33 = vmul.f32 %v1909_v31, %v999_v7  ;;  %v1001_v37 = vpop.permute.xlu0 %1000 }
 0xf44   :  { %v1005_v39 = vmul.f32 %v1911_v36, %v1001_v37 }
 0xf45   :  { %v1006_v34 = vpack.c.bf16 %v1004_v33, %v1004_v33  ;;  %v1308_v10 = vrot.slane %v1004_v33, 5 }
 0xf46   :  { %v1007_v40 = vpack.c.bf16 %v1005_v39, %v1005_v39  ;;  %v1309_v32 = vrot.slane %v1005_v39, 4 }
 0xf47   :  { %v1010_v9 = vunpack.c.l.b16 %v1006_v34 }
 0xf48   :  { %v1011_v41 = vunpack.c.l.b16 %v1007_v40  ;;  %v2309_v28 = vsel %vm346_vm2, %v1309_v32, %v1308_v10 }
 0xf49   :  { %v1012_v42 = vrot.slane %v1010_v9, 5 }
 0xf4a   :  { %v1013_v43 = vrot.slane %v1011_v41, 4 }
 0xf4c   :  { %v1014_v44 = vsel %vm346_vm2, %v1013_v43, %v1012_v42 }
 0xf4d   :  { %v1015_v46 = vpack.c.b16 %v1014_v44, %v1014_v44 }
 0xf4f   :  { %1588 = vmatmul.mubr.msk.bf16.vlgmr.msra.gmra.mrb[12].mxu1 %vm222_vm3, %v1015_v46 }
0x1022   :  { %v1053_v47 = vpop.f32.mrb[12].mxu1 }
0x1023   :  { %v1055_v35 = vpop.f32.mrb[13].mxu1  ;;  %v1062_v53 = vrot.slane %v1053_v47, 2  ;;  %v1064_v57 = vrot.slane %v1053_v47, 3 }
0x1024   :  { %v1063_v48 = vrot.slane %v1055_v35, 2  ;;  %v1057_v49 = vpop.f32.mrb[14].mxu1  ;;  %v1065_v17 = vrot.slane %v1055_v35, 3 }
0x1025   :  { %v1058_v24 = vpop.f32.mrb[15].mxu1  ;;  %v1070_v54 = vadd.f32 %v1062_v53, %v2128_v3  ;;  %v1072_v29 = vadd.f32 %v1064_v57, %v2126_v2 }
0x1026   :  { %v1071_v26 = vadd.f32 %v1063_v48, %v2118_v58  ;;  %v1073_v27 = vadd.f32 %v1065_v17, %v2120_v59 }
0x1027   :  { %v1589_v60 = vmul.f32 -1.442695, %v1070_v54  ;;  %v1591_v61 = vmul.f32 -1.442695, %v1072_v29 }
0x1028   :  { %1912 = vtanh.f32 %v1071_v26  ;;  %v1590_v13 = vmul.f32 -1.442695, %v1071_v26  ;;  %v1592_v7 = vmul.f32 -1.442695, %v1073_v27 }
0x1029   :  { %1914 = vtanh.f32 %v1073_v27 }
0x102a   :  { %1916 = vpow2.f32 %v1589_v60 }
0x102b   :  { %1918 = vpow2.f32 %v1591_v61 }
0x1032   :  { %v1913_v38 = vpop.eup %1912 }
0x1033   :  { %1110 = vrot.lane.b32.xlu1 %v1913_v38, %s1966_s16  ;;  %v1915_v52 = vpop.eup %1914 }
0x1034   :  { %1112 = vrot.lane.b32.xlu0 %v1915_v52, %s1966_s16  ;;  %v1917_v62 = vpop.eup %1916 }
0x1035   :  { %v1086_v63 = vadd.f32 1.0, %v1917_v62  ;;  %v1919_v0 = vpop.eup %1918 }
0x1036   :  { %v1088_v1 = vadd.f32 1.0, %v1919_v0 }
0x1037   :  { %1920 = vrcp.f32 %v1086_v63 }
0x1038   :  { %1922 = vrcp.f32 %v1088_v1 }
0x1041   :  { %v1921_v5 = vpop.eup %1920 }
0x1042   :  { %v1923_v12 = vpop.eup %1922  ;;  %v1106_v18 = vmul.f32 %v1921_v5, %v1102_v15 }
0x1043   :  { %v1107_v21 = vmul.f32 %v1923_v12, %v1103_v20  ;;  %v1349_v20 = vld [vmem:[%s2577_s5 + $0x88] sm:$0xff] }
0x10a5   :  { %v1111_v6 = vpop.permute.xlu1 %1110 }
0x10a6   :  { %v1116_v50 = vmul.f32 %v1921_v5, %v1111_v6  ;;  %v1113_v55 = vpop.permute.xlu0 %1112 }
0x10a7   :  { %v1117_v14 = vmul.f32 %v1923_v12, %v1113_v55 }
0x10a8   :  { %1120 = vrot.lane.b32.xlu1 %v1116_v50, %s1966_s16 }
0x10a9   :  { %1122 = vrot.lane.b32.xlu0 %v1117_v14, %s1966_s16 }
0x111a   :  { %v1121_v19 = vpop.permute.xlu1 %1120 }
0x111b   :  { %v2322_v45 = vadd.f32 %v1121_v19, %v1106_v18  ;;  %v1123_v4 = vpop.permute.xlu0 %1122 }
0x111c   :  { %v2326_v25 = vadd.f32 %v1123_v4, %v1107_v21  ;;  %v1332_v21 = vld [vmem:[%s2577_s5] sm:$0xff] }
0x111d   :  { %1924 = vtanh.f32 %v2322_v45 }
0x111e   :  { %1926 = vtanh.f32 %v2326_v25 }
0x111f   :  { %1928 = vpow2.f32 %v1590_v13  ;;  %v1351_v13 = vld [vmem:[%s2577_s5 + $0x98] sm:$0xff] }
0x1120   :  { %1930 = vpow2.f32 %v1592_v7 }
0x1127   :  { %v1925_v30 = vpop.eup %1924 }
0x1128   :  { %1132 = vrot.lane.b32.xlu1 %v1925_v30, %s1966_s16  ;;  %v1927_v31 = vpop.eup %1926  ;;  %v1333_v30 = vld [vmem:[%s2577_s5 + $0x8] sm:$0xff] }
0x1129   :  { %1134 = vrot.lane.b32.xlu0 %v1927_v31, %s1966_s16  ;;  %v1929_v33 = vpop.eup %1928  ;;  %v1350_v31 = vld [vmem:[%s2577_s5 + $0x90] sm:$0xff]  ;;  %v1679_v7 = vpack.c.bf16 %v1333_v30, %v1332_v21  ;;  %v1381_v30 = vld [vmem:[%s2577_s5 + $0x188] sm:$0xff] }
0x112a   :  { %v1087_v16 = vadd.f32 1.0, %v1929_v33  ;;  %v1931_v34 = vpop.eup %1930  ;;  %v1681_v33 = vpack.c.bf16 %v1351_v13, %v1350_v31  ;;  %v1364_v31 = vld [vmem:[%s2577_s5 + $0x100] sm:$0xff] }
0x112b   :  { %v1089_v36 = vadd.f32 1.0, %v1931_v34  ;;  %v1335_v34 = vld [vmem:[%s2577_s5 + $0x18] sm:$0xff] }
0x112c   :  { %1932 = vrcp.f32 %v1087_v16  ;;  %v1334_v16 = vld [vmem:[%s2577_s5 + $0x10] sm:$0xff] }
0x112d   :  { %1934 = vrcp.f32 %v1089_v36  ;;  %v1352_v36 = vld [vmem:[%s2577_s5 + $0xa0] sm:$0xff] }
0x1136   :  { %v1933_v37 = vpop.eup %1932 }
0x1137   :  { %v1935_v40 = vpop.eup %1934 }
0x119a   :  { %v1133_v39 = vpop.permute.xlu1 %1132 }
0x119b   :  { %v1138_v9 = vmul.f32 %v1933_v37, %v1133_v39  ;;  %v1135_v32 = vpop.permute.xlu0 %1134  ;;  %v1353_v37 = vld [vmem:[%s2577_s5 + $0xa8] sm:$0xff]  ;;  %v1683_v39 = vpack.c.bf16 %v1335_v34, %v1334_v16  ;;  %v1383_v16 = vld [vmem:[%s2577_s5 + $0x198] sm:$0xff] }
0x119c   :  { %v1139_v41 = vmul.f32 %v1935_v40, %v1135_v32  ;;  %v1337_v40 = vld [vmem:[%s2577_s5 + $0x28] sm:$0xff]  ;;  %v1354_v32 = vld [vmem:[%s2577_s5 + $0xb0] sm:$0xff] }
0x119d   :  { %v1140_v10 = vpack.c.bf16 %v1138_v9, %v1138_v9  ;;  %v1316_v43 = vrot.slane %v1138_v9, 6  ;;  %v1685_v9 = vpack.c.bf16 %v1353_v37, %v1352_v36  ;;  %v1366_v37 = vld [vmem:[%s2577_s5 + $0x110] sm:$0xff] }
0x119e   :  { %v1141_v44 = vpack.c.bf16 %v1139_v41, %v1139_v41  ;;  %v1317_v46 = vrot.slane %v1139_v41, 5  ;;  %v1355_v41 = vld [vmem:[%s2577_s5 + $0xb8] sm:$0xff] }
0x119f   :  { %v1144_v42 = vunpack.c.l.b16 %v1140_v10  ;;  %v1336_v10 = vld [vmem:[%s2577_s5 + $0x20] sm:$0xff] }
0x11a0   :  { %v1145_v47 = vunpack.c.l.b16 %v1141_v44  ;;  %v2332_v48 = vsel %vm346_vm2, %v1317_v46, %v1316_v43  ;;  %v1689_v43 = vpack.c.bf16 %v1355_v41, %v1354_v32  ;;  %v1338_v44 = vld [vmem:[%s2577_s5 + $0x30] sm:$0xff]  ;;  %v1339_v46 = vld [vmem:[%s2577_s5 + $0x38] sm:$0xff] }
0x11a1   :  { %v1146_v35 = vrot.slane %v1144_v42, 6  ;;  %v1687_v42 = vpack.c.bf16 %v1337_v40, %v1336_v10  ;;  %v1385_v10 = vld [vmem:[%s2577_s5 + $0x1a8] sm:$0xff] }
0x11a2   :  { %v1147_v49 = vrot.slane %v1145_v47, 5  ;;  %v1356_v47 = vld [vmem:[%s2577_s5 + $0xc0] sm:$0xff] }
0x11a4   :  { %v1148_v17 = vsel %vm346_vm2, %v1147_v49, %v1146_v35  ;;  %v1357_v35 = vld [vmem:[%s2577_s5 + $0xc8] sm:$0xff]  ;;  %v1691_v49 = vpack.c.bf16 %v1339_v46, %v1338_v44  ;;  %v1386_v44 = vld [vmem:[%s2577_s5 + $0x1b0] sm:$0xff] }
0x11a5   :  { %v1149_v24 = vpack.c.b16 %v1148_v17, %v1148_v17  ;;  %v1693_v17 = vpack.c.bf16 %v1357_v35, %v1356_v47  ;;  %v1370_v46 = vld [vmem:[%s2577_s5 + $0x130] sm:$0xff]  ;;  %v1371_v47 = vld [vmem:[%s2577_s5 + $0x138] sm:$0xff]  ;;  %v1388_v35 = vld [vmem:[%s2577_s5 + $0x1c0] sm:$0xff] }
0x11a7   :  { %1593 = vmatmul.mubr.msk.bf16.vlgmr.msra.gmra.mrb[16].mxu0 %vm222_vm3, %v1149_v24  ;;  %v1340_v24 = vld [vmem:[%s2577_s5 + $0x40] sm:$0xff] }
0x127a   :  { %v1187_v26 = vpop.f32.mrb[16].mxu0 }
0x127b   :  { %v1189_v27 = vpop.f32.mrb[17].mxu0  ;;  %v1196_v62 = vrot.slane %v1187_v26, 1  ;;  %v1198_v0 = vrot.slane %v1187_v26, 2  ;;  %v1341_v26 = vld [vmem:[%s2577_s5 + $0x48] sm:$0xff] }
0x127c   :  { %v1197_v38 = vrot.slane %v1189_v27, 1  ;;  %v1191_v52 = vpop.f32.mrb[18].mxu0  ;;  %v1199_v53 = vrot.slane %v1189_v27, 2  ;;  %v1358_v27 = vld [vmem:[%s2577_s5 + $0xd0] sm:$0xff] }
0x127d   :  { %v1192_v54 = vpop.f32.mrb[19].mxu0  ;;  %v1204_v63 = vadd.f32 %v1196_v62, %v2128_v3  ;;  %v1695_v52 = vpack.c.bf16 %v1341_v26, %v1340_v24  ;;  %v1236_v62 = vrot.slane %v2322_v45, 7  ;;  %v1344_v45 = vld [vmem:[%s2577_s5 + $0x60] sm:$0xff] }
0x127e   :  { %v2337_v57 = vadd.f32 %v1197_v38, %v2118_v58  ;;  %v2341_v60 = vadd.f32 %v1199_v53, %v2120_v59  ;;  %v1206_v58 = vadd.f32 %v1198_v0, %v2126_v2  ;;  %v1348_v2 = vld [vmem:[%s2577_s5 + $0x80] sm:$0xff]  ;;  %v1359_v38 = vld [vmem:[%s2577_s5 + $0xd8] sm:$0xff]  ;;  %v1342_v54 = vld [vmem:[%s2577_s5 + $0x50] sm:$0xff] }
0x127f   :  { %v1594_v1 = vmul.f32 -1.442695, %v1204_v63  ;;  %v1677_v4 = vpack.c.bf16 %v1349_v20, %v1348_v2  ;;  %v1697_v53 = vpack.c.bf16 %v1359_v38, %v1358_v27  ;;  %v1347_v2 = vld [vmem:[%s2577_s5 + $0x78] sm:$0xff]  ;;  %v1372_v26 = vld [vmem:[%s2577_s5 + $0x140] sm:$0xff]  ;;  %v1373_v27 = vld [vmem:[%s2577_s5 + $0x148] sm:$0xff] }
0x1280   :  { %1936 = vtanh.f32 %v2337_v57  ;;  %v1596_v5 = vmul.f32 -1.442695, %v1206_v58  ;;  %v1237_v58 = vrot.slane %v2326_v25, 7  ;;  %v1390_v38 = vld [vmem:[%s2577_s5 + $0x1d0] sm:$0xff] }
0x1281   :  { %1938 = vtanh.f32 %v2341_v60  ;;  %1678 = vmatprep.subr.bf16.mxu1 %v1677_v4  ;;  %v1380_v4 = vld [vmem:[%s2577_s5 + $0x180] sm:$0xff] }
0x1282   :  { %1940 = vpow2.f32 %v1594_v1  ;;  %1680 = vmatpush3.bf16.msra.mxu1 %v1679_v7  ;;  %v1709_v13 = vpack.c.bf16 %v1381_v30, %v1380_v4  ;;  %v1365_v7 = vld [vmem:[%s2577_s5 + $0x108] sm:$0xff] }
0x1283   :  { %1942 = vpow2.f32 %v1596_v5  ;;  %1682 = vmatprep.subr.bf16.mxu1 %v1681_v33  ;;  %v1360_v5 = vld [vmem:[%s2577_s5 + $0xe0] sm:$0xff]  ;;  %v1382_v33 = vld [vmem:[%s2577_s5 + $0x190] sm:$0xff]  ;;  %v1711_v34 = vpack.c.bf16 %v1365_v7, %v1364_v31 }
0x1284   :  { %v1713_v36 = vpack.c.bf16 %v1383_v16, %v1382_v33  ;;  %1710 = vmatprep.subr.bf16.mxu0 %v1709_v13 }
0x1285   :  { %1712 = vmatpush3.bf16.msra.mxu0 %v1711_v34 }
0x1286   :  { %1684 = vmatpush3.bf16.msra.mxu1 %v1683_v39  ;;  %v1367_v39 = vld [vmem:[%s2577_s5 + $0x118] sm:$0xff]  ;;  %1714 = vmatprep.subr.bf16.mxu0 %v1713_v36 }
0x1287   :  { %1686 = vmatprep.subr.bf16.mxu1 %v1685_v9  ;;  %v1384_v9 = vld [vmem:[%s2577_s5 + $0x1a0] sm:$0xff]  ;;  %v1715_v40 = vpack.c.bf16 %v1367_v39, %v1366_v37 }
0x1288   :  { %v1717_v41 = vpack.c.bf16 %v1385_v10, %v1384_v9 }
0x1289   :  { %1716 = vmatpush3.bf16.msra.mxu0 %v1715_v40 }
0x128a   :  { %v1937_v29 = vpop.eup %1936  ;;  %1688 = vmatpush3.bf16.msra.mxu1 %v1687_v42  ;;  %v1368_v42 = vld [vmem:[%s2577_s5 + $0x120] sm:$0xff]  ;;  %1718 = vmatprep.subr.bf16.mxu0 %v1717_v41 }
0x128b   :  { %1244 = vrot.lane.b32.xlu1 %v1937_v29, %s1966_s16  ;;  %v1939_v61 = vpop.eup %1938  ;;  %1690 = vmatprep.subr.bf16.mxu1 %v1689_v43  ;;  %v1343_v29 = vld [vmem:[%s2577_s5 + $0x58] sm:$0xff]  ;;  %v1369_v43 = vld [vmem:[%s2577_s5 + $0x128] sm:$0xff] }
0x128c   :  { %1246 = vrot.lane.b32.xlu0 %v1939_v61, %s1966_s16  ;;  %v1941_v59 = vpop.eup %1940  ;;  %v1699_v61 = vpack.c.bf16 %v1343_v29, %v1342_v54  ;;  %v1719_v22 = vpack.c.bf16 %v1369_v43, %v1368_v42  ;;  %v1374_v29 = vld [vmem:[%s2577_s5 + $0x150] sm:$0xff] }
0x128d   :  { %v1220_v6 = vadd.f32 1.0, %v1941_v59  ;;  %v1943_v50 = vpop.eup %1942  ;;  %v1361_v59 = vld [vmem:[%s2577_s5 + $0xe8] sm:$0xff] }
0x128e   :  { %v1222_v12 = vadd.f32 1.0, %v1943_v50  ;;  %1692 = vmatpush3.bf16.msra.mxu1 %v1691_v49  ;;  %v1701_v50 = vpack.c.bf16 %v1361_v59, %v1360_v5  ;;  %v1389_v49 = vld [vmem:[%s2577_s5 + $0x1c8] sm:$0xff]  ;;  %1720 = vmatpush3.bf16.msra.mxu0 %v1719_v22 }
0x128f   :  { %1944 = vrcp.f32 %v1220_v6  ;;  %1694 = vmatprep.subr.bf16.mxu1 %v1693_v17  ;;  %v1723_v17 = vpack.c.bf16 %v1371_v47, %v1370_v46  ;;  %v1725_v24 = vpack.c.bf16 %v1389_v49, %v1388_v35  ;;  %v1377_v5 = vld [vmem:[%s2577_s5 + $0x168] sm:$0xff] }
0x1290   :  { %1946 = vrcp.f32 %v1222_v12  ;;  %v1345_v12 = vld [vmem:[%s2577_s5 + $0x68] sm:$0xff] }
0x1292   :  { %1696 = vmatpush3.bf16.msra.mxu1 %v1695_v52  ;;  %v1391_v52 = vld [vmem:[%s2577_s5 + $0x1d8] sm:$0xff] }
0x1293   :  { %1698 = vmatprep.subr.bf16.mxu1 %v1697_v53  ;;  %v1727_v53 = vpack.c.bf16 %v1373_v27, %v1372_v26  ;;  %v1729_v54 = vpack.c.bf16 %v1391_v52, %v1390_v38 }
0x1296   :  { %1700 = vmatpush3.bf16.msra.mxu1 %v1699_v61  ;;  %v1375_v61 = vld [vmem:[%s2577_s5 + $0x158] sm:$0xff] }
0x1297   :  { %1702 = vmatprep.subr.bf16.mxu1 %v1701_v50  ;;  %v1597_v50 = vmul.f32 -1.442695, %v2341_v60  ;;  %v1379_v60 = vld [vmem:[%s2577_s5 + $0x178] sm:$0xff] }
0x1299   :  { %v1945_v55 = vpop.eup %1944 }
0x129a   :  { %v1947_v18 = vpop.eup %1946  ;;  %v1240_v63 = vmul.f32 %v1945_v55, %v1236_v62  ;;  %v1392_v62 = vld [vmem:[%s2577_s5 + $0x1e0] sm:$0xff] }
0x129b   :  { %v1241_v6 = vmul.f32 %v1947_v18, %v1237_v58  ;;  %v1376_v58 = vld [vmem:[%s2577_s5 + $0x160] sm:$0xff] }
0x129c   :  { %v1735_v59 = vpack.c.bf16 %v1377_v5, %v1376_v58 }
0x12fd   :  { %v1245_v14 = vpop.permute.xlu1 %1244 }
0x12fe   :  { %v1250_v15 = vmul.f32 %v1945_v55, %v1245_v14  ;;  %v1247_v3 = vpop.permute.xlu0 %1246  ;;  %v1703_v55 = vpack.c.bf16 %v1345_v12, %v1344_v45 }
0x12ff   :  { %v1251_v19 = vmul.f32 %v1947_v18, %v1247_v3  ;;  %v1363_v18 = vld [vmem:[%s2577_s5 + $0xf8] sm:$0xff] }
0x1300   :  { %1254 = vrot.lane.b32.xlu1 %v1250_v15, %s1966_s16  ;;  %1704 = vmatpush3.bf16.msra.mxu1 %v1703_v55  ;;  %v1362_v15 = vld [vmem:[%s2577_s5 + $0xf0] sm:$0xff] }
0x1301   :  { %1256 = vrot.lane.b32.xlu0 %v1251_v19, %s1966_s16  ;;  %v1705_v3 = vpack.c.bf16 %v1363_v18, %v1362_v15  ;;  %v1346_v19 = vld [vmem:[%s2577_s5 + $0x70] sm:$0xff]  ;;  %v1395_v15 = vld [vmem:[%s2577_s5 + $0x1f8] sm:$0xff] }
0x1302   :  { %v1707_v20 = vpack.c.bf16 %v1347_v2, %v1346_v19 }
0x1303   :  { %1706 = vmatprep.subr.bf16.mxu1 %v1705_v3 }
0x1304   :  { %1708 = vmatpush3.bf16.msra.mxu1 %v1707_v20 }
0x1372   :  { %v1255_v0 = vpop.permute.xlu1 %1254 }
0x1373   :  { %v1260_v1 = vadd.f32 %v1255_v0, %v1240_v63  ;;  %v1257_v25 = vpop.permute.xlu0 %1256  ;;  %v1393_v63 = vld [vmem:[%s2577_s5 + $0x1e8] sm:$0xff]  ;;  %v1731_v0 = vpack.c.bf16 %v1375_v61, %v1374_v29 }
0x1374   :  { %v1261_v14 = vadd.f32 %v1257_v25, %v1241_v6  ;;  %v1595_v6 = vmul.f32 -1.442695, %v2337_v57  ;;  %v1378_v57 = vld [vmem:[%s2577_s5 + $0x170] sm:$0xff] }
0x1375   :  { %1948 = vtanh.f32 %v1260_v1  ;;  %v1733_v1 = vpack.c.bf16 %v1393_v63, %v1392_v62  ;;  %v1739_v3 = vpack.c.bf16 %v1379_v60, %v1378_v57 }
0x1376   :  { %1950 = vtanh.f32 %v1261_v14  ;;  %v1394_v14 = vld [vmem:[%s2577_s5 + $0x1f0] sm:$0xff] }
0x1377   :  { %1952 = vpow2.f32 %v1595_v6  ;;  %v1737_v18 = vpack.c.bf16 %v1395_v15, %v1394_v14 }
0x1378   :  { %1954 = vpow2.f32 %v1597_v50 }
0x137f   :  { %v1949_v21 = vpop.eup %1948 }
0x1380   :  { %1266 = vrot.lane.b32.xlu1 %v1949_v21, %s1966_s16  ;;  %v1951_v32 = vpop.eup %1950 }
0x1381   :  { %1268 = vrot.lane.b32.xlu0 %v1951_v32, %s1966_s16  ;;  %v1953_v45 = vpop.eup %1952 }
0x1382   :  { %v1221_v12 = vadd.f32 1.0, %v1953_v45  ;;  %v1955_v25 = vpop.eup %1954 }
0x1383   :  { %v1223_v55 = vadd.f32 1.0, %v1955_v25 }
0x1384   :  { %1745 = vrot.lane.b32.xlu1 %v1744_v23, %s1966_s16  ;;  %v1721_v23 = vpack.c.bf16 %v1387_v56, %v1386_v44  ;;  %1956 = vrcp.f32 %v1221_v12 }
0x1385   :  { %1958 = vrcp.f32 %v1223_v55 }
0x1386   :  { %1722 = vmatprep.subr.bf16.mxu0 %v1721_v23 }
0x1387   :  { %1724 = vmatpush3.bf16.msra.mxu0 %v1723_v17 }
0x1388   :  { %1726 = vmatprep.subr.bf16.mxu0 %v1725_v24 }
0x138b   :  { %1728 = vmatpush3.bf16.msra.mxu0 %v1727_v53 }
0x138c   :  { %1730 = vmatprep.subr.bf16.mxu0 %v1729_v54 }
0x138e   :  { %v1957_v2 = vpop.eup %1956 }
0x138f   :  { %1732 = vmatpush3.bf16.msra.mxu0 %v1731_v0  ;;  %v1959_v4 = vpop.eup %1958 }
0x1390   :  { %1734 = vmatprep.subr.bf16.mxu0 %v1733_v1 }
0x1393   :  { %1736 = vmatpush3.bf16.msra.mxu0 %v1735_v59 }
0x1394   :  { %1738 = vmatprep.subr.bf16.mxu0 %v1737_v18 }
0x1397   :  { %1740 = vmatpush3.bf16.msra.mxu0 %v1739_v3 }
0x13f2   :  { %v1267_v19 = vpop.permute.xlu1 %1266 }
0x13f3   :  { %v1272_v20 = vmul.f32 %v1957_v2, %v1267_v19  ;;  %v1269_v30 = vpop.permute.xlu0 %1268 }
0x13f4   :  { %v1273_v7 = vmul.f32 %v1959_v4, %v1269_v30 }
0x13f5   :  { %v1322_v33 = vrot.slane %v1272_v20, 7 }
0x13f6   :  { %v1746_v21 = vpop.permute.xlu1 %1745  ;;  %v1323_v36 = vrot.slane %v1273_v7, 6 }
0x13f7   :  { %v1748_v31 = vunpack.i.h.bf16 %v1746_v21  ;;  %v1747_v13 = vunpack.i.l.bf16 %v1746_v21 }
0x13f8   :  { %v1324_v37 = vsel %vm346_vm2, %v1323_v36, %v1322_v33 }
0x13f9   :  { %v1329_v16 = vsel %vm222_vm3, %v2207_v11, %v1747_v13  ;;  %v1328_v34 = vsel %vm222_vm3, %v2143_v51, %v1748_v31  ;;  %v1749_v39 = vpack.i.bf16 %v2309_v28, %v1324_v37  ;;  %v1598_v28 = vld [vmem:[%s2578_s6] ss:$0 sm:$0xff] }
0x13fa   :  { %1467 = vmatprep.mubr.f32.mxu1 %v1329_v16 }
0x13fb   :  { %1468 = vmatmul.mubr.f32.vlgmr.msra.gmra.mrb[16].mxu1 %v1328_v34  ;;  %1750 = vrot.lane.b32.xlu0 %v1749_v39, %s1966_s16 }
0x146d   :  { %v1751_v9 = vpop.permute.xlu0 %1750 }
0x146e   :  { %v1753_v10 = vunpack.i.h.bf16 %v1751_v9  ;;  %v1752_v40 = vunpack.i.l.bf16 %v1751_v9 }
0x1470   :  { %v1331_v32 = vsel %vm222_vm3, %v2332_v48, %v1752_v40  ;;  %v1330_v11 = vsel %vm222_vm3, %v2272_v8, %v1753_v10  ;;  %v1963_v48 = vld [vmem:[%s2572_s0] sm:$0x3] }
0x1471   :  { %1537 = vmatprep.mubr.f32.mxu0 %v1331_v32 }
0x1472   :  { %1538 = vmatmul.mubr.f32.vlgmr.msra.gmra.mrb[20].mxu0 %v1330_v11 }
0x14ce   :  { %v1631_v51 = vpop.f32.mrb[16].mxu1 }
0x14cf   :  { %v1632_v41 = vpop.f32.mrb[17].mxu1 }
0x14d0   :  { %v1633_v42 = vadd.f32 %v1632_v41, %v1631_v51 }
0x14d2   :  { %v1470_v56 = vadd.f32 %v1633_v42, %v1598_v28 }
0x1545   :  { %v1666_v43 = vpop.f32.mrb[20].mxu0 }
0x1546   :  { %v1667_v44 = vpop.f32.mrb[21].mxu0 }
0x1547   :  { %v1668_v22 = vadd.f32 %v1667_v44, %v1666_v43 }
0x1549   :  { %v1540_v23 = vadd.f32 %v1668_v22, %v1470_v56 }
0x154b   :  { %v1543_v46 = vadd.f32 %v1963_v48, %v1540_v23 }
0x154d   :  { %1544 = vst [vmem:[%s2579_s7] sm:$0x3] %v1543_v46 }

</bundles_post_ra>
